<compile_context>
chip_gen: v7x
topology: tpu7x:2x2x1
jax: 0.10.0
libtpu: 0.0.40
codegen_flags: <defaults>
</compile_context>

<pallas_src>
import math

import jax
import jax.numpy as jnp
import numpy as np
from jax.experimental import pallas as pl
from jax.experimental.pallas import tpu as pltpu

C1 = 24          # conv1 output channels (fixed by the module)
C2 = 24          # conv2 output channels
KS = 3           # 3x3 kernels
TAPS = KS * KS   # 9


def _make_fused_kernel(H, W, block_batch):
    HW = H * W
    L = block_batch * HW

    # Tap k = (ky, kx) reads source pixel (h + ky - 1, w + kx - 1); in packed
    # lane coordinates m = b*HW + h*W + w that is column m + off_k.
    # rolled[m] = src[(m + off_k) mod L]; wrapped / cross-image / padded reads
    # are zeroed by the per-image mask.
    offs = [(k // KS - 1) * W + (k % KS - 1) for k in range(TAPS)]
    shifts = [(-off) % L for off in offs]

    def kernel(x_ref, m_ref, w1_ref, b1_ref, w2_ref, b2_ref, w3_ref, b3_ref,
               o_ref, xt_ref, taps_ref):
        # x_ref    : (1, L)          B images, flattened m = b*HW + h*W + w
        # m_ref    : (TAPS, L)       "same"-padding validity masks (0/1 f32)
        # w1_ref   : (C1, TAPS)      w1[c, k]
        # b1_ref   : (C1, 1)
        # w2_ref   : (C2, TAPS*C1)   w2[co, k*C1 + ci]
        # b2_ref   : (C2, 1)
        # w3_ref   : (TAPS, C2)      w3[k, c]
        # b3_ref   : (1, 1)
        # o_ref    : (1, L)
        # xt_ref   : (TAPS, L)       VMEM scratch: conv1 taps / conv3 partials
        # taps_ref : (TAPS*C1, L)    VMEM scratch: conv2 im2col matrix

        def tap(v, k):
            # Shifted-and-masked view of v for tap k (XLU roll + VPU mask mul).
            if offs[k] == 0:          # center tap: identity, mask is all-ones
                return v
            return pltpu.roll(v, shifts[k], axis=1) * m_ref[k:k + 1, :]

        # ---- conv1 on the MXU: (C1, 9) @ (9, L) ------------------------------
        x = x_ref[...]
        for k in range(TAPS):
            xt_ref[k:k + 1, :] = tap(x, k)
        a1 = jnp.dot(w1_ref[...], xt_ref[...],
                     preferred_element_type=jnp.float32)
        a1 = jnp.maximum(a1 + b1_ref[...], 0.0)       # (C1, L)

        # ---- conv2: im2col via XLU rolls -> one K=216 MXU matmul -------------
        for k in range(TAPS):
            taps_ref[k * C1:(k + 1) * C1, :] = tap(a1, k)
        a2 = jnp.dot(w2_ref[...], taps_ref[...],
                     preferred_element_type=jnp.float32)
        a2 = jnp.maximum(a2 + b2_ref[...], 0.0)       # (C2, L)

        # ---- conv3 (Cout=1): collapse channels first (small matmul), then
        #      9 rolled VPU adds -> lane-dense (1, L) result -------------------
        xt_ref[...] = jnp.dot(w3_ref[...], a2,
                              preferred_element_type=jnp.float32)  # (9, L)
        acc = tap(xt_ref[0:1, :], 0)
        for k in range(1, TAPS):
            acc = acc + tap(xt_ref[k:k + 1, :], k)
        o_ref[...] = (acc + b3_ref[...]).astype(o_ref.dtype)

    return kernel


def _tap_masks(H, W, block_batch):
    """Grid-invariant (TAPS, B*H*W) 0/1 masks; per-image row index so dy=+-1
    taps never validate reads into a neighbouring packed image."""
    HW = H * W
    col = np.arange(block_batch * HW)
    h = (col // W) % H
    w = col % W
    masks = np.empty((TAPS, block_batch * HW), np.float32)
    for k in range(TAPS):
        dy, dx = k // KS - 1, k % KS - 1
        masks[k] = ((h + dy >= 0) & (h + dy < H)
                    & (w + dx >= 0) & (w + dx < W)).astype(np.float32)
    return jnp.asarray(masks)


def _pick_block_batch(N, HW):
    """Images packed per grid step along the lane axis.

    Sized so the per-step VMEM footprint (dominated by the (216, B*HW) im2col
    scratch) stays well under the smallest default scoped VMEM (16 MiB, v5e;
    32 MiB, v6e/v7x), and so the grid keeps >= 2 steps when N >= 2 so
    dimension_semantics=("parallel",) can shard across v7x's two TensorCores.
    Single-TC chips (v5e/v6e) with large N may pass block_batch=N for one big
    step instead.
    """
    per_image_bytes = 4 * HW * (TAPS * C1 + 3 * TAPS + 2 * C1 + 8)
    budget = 12 << 20
    b = max(1, min(N, budget // per_image_bytes))
    if N >= 2:
        b = min(b, -(-N // 2))     # ceil(N/2): keep at least 2 grid steps
    return b


def dqn_forward(x_nchw, params, block_batch=None):
    """Forward pass of DQNModel. Input/output layout: NCHW (PyTorch convention)."""
    (w1, b1), (w2, b2), (w3, b3) = params        # HWIO weights
    N, cin, H, W = x_nchw.shape
    assert cin == 1
    HW = H * W

    B = _pick_block_batch(N, HW) if block_batch is None else block_batch
    if B < N and (B * HW) % 128 != 0:
        B = N                                    # single step: block = full array
    num_steps = -(-N // B)
    N_pad = num_steps * B
    L = B * HW

    x = x_nchw.astype(jnp.float32)
    if N_pad != N:
        x = jnp.pad(x, ((0, N_pad - N), (0, 0), (0, 0), (0, 0)))
    # Column index m = n_img*HW + h*W + w (channel dim is 1 -> plain reshape).
    x_flat = x.reshape(1, N_pad * HW)

    masks = _tap_masks(H, W, B)                  # (TAPS, L), resident in VMEM
    w1_cm = w1.reshape(TAPS, C1).T               # (C1, 9)    w1[c, k]
    w2_cm = w2.reshape(TAPS * C1, C2).T          # (C2, 216)  w2[co, k*C1+ci]
    w3_cm = w3.reshape(TAPS, C2)                 # (9, C2)    w3[k, c]
    b1_cm = b1.reshape(C1, 1)
    b2_cm = b2.reshape(C2, 1)
    b3_cm = b3.reshape(1, 1)

    flops = 2 * N_pad * HW * TAPS * (C1 + C1 * C2 + C2 + 1)
    bytes_accessed = 4 * (2 * N_pad * HW + masks.size + w1_cm.size
                          + w2_cm.size + w3_cm.size + C1 + C2 + 1)

    out_flat = pl.pallas_call(
        _make_fused_kernel(H, W, B),
        out_shape=jax.ShapeDtypeStruct((1, N_pad * HW), jnp.float32),
        grid=(num_steps,),
        in_specs=[
            pl.BlockSpec((1, L), lambda n: (0, n)),            # x (B images)
            pl.BlockSpec((TAPS, L), lambda n: (0, 0)),         # tap masks
            pl.BlockSpec((C1, TAPS), lambda n: (0, 0)),        # w1
            pl.BlockSpec((C1, 1), lambda n: (0, 0)),           # b1
            pl.BlockSpec((C2, TAPS * C1), lambda n: (0, 0)),   # w2
            pl.BlockSpec((C2, 1), lambda n: (0, 0)),           # b2
            pl.BlockSpec((TAPS, C2), lambda n: (0, 0)),        # w3
            pl.BlockSpec((1, 1), lambda n: (0, 0)),            # b3
        ],
        out_specs=pl.BlockSpec((1, L), lambda n: (0, n)),
        scratch_shapes=[
            pltpu.VMEM((TAPS, L), jnp.float32),        # conv1 taps / conv3 partials
            pltpu.VMEM((TAPS * C1, L), jnp.float32),   # conv2 im2col matrix
        ],
        compiler_params=pltpu.CompilerParams(
            dimension_semantics=("parallel",)),
        cost_estimate=pl.CostEstimate(flops=flops, transcendentals=0,
                                      bytes_accessed=bytes_accessed),
    )(x_flat, masks, w1_cm, b1_cm, w2_cm, b2_cm, w3_cm, b3_cm)

    out = out_flat.reshape(N_pad, 1, H, W)
    return out[:N] if N_pad != N else out


def init_params(key):
    """Deterministic init, PyTorch-default-style uniform bounds (HWIO weights)."""
    shapes = [
        (3, 3, 1, 24),   # conv1: HWIO
        (3, 3, 24, 24),  # conv2
        (3, 3, 24, 1),   # conv3
    ]
    params = []
    for shp in shapes:
        key, kw, kb = jax.random.split(key, 3)
        fan_in = shp[0] * shp[1] * shp[2]
        bound = 1.0 / math.sqrt(fan_in)
        w = jax.random.uniform(kw, shp, jnp.float32, -bound, bound)
        b = jax.random.uniform(kb, (shp[3],), jnp.float32, -bound, bound)
        params.append((w, b))
    return params


def _reference_forward(x_nchw, params):
    """Pure-JAX reference (lax.conv) for correctness checking."""
    x = jnp.transpose(x_nchw, (0, 2, 3, 1))
    dn = jax.lax.conv_dimension_numbers(x.shape, params[0][0].shape,
                                        ("NHWC", "HWIO", "NHWC"))
    for i, (w, b) in enumerate(params):
        x = jax.lax.conv_general_dilated(
            x, w, window_strides=(1, 1), padding="SAME", dimension_numbers=dn
        ) + b[None, None, None, :]
        if i < 2:
            x = jnp.maximum(x, 0.0)
    return jnp.transpose(x, (0, 3, 1, 2))


if __name__ == "__main__":
    key = jax.random.PRNGKey(0)
    k_x, k_p = jax.random.split(key)
    params = init_params(k_p)
    fwd = jax.jit(dqn_forward)

    # Small input consistent with the module: batch=2, channels=1, spatial 16x16.
    x = jax.random.normal(k_x, (2, 1, 16, 16), dtype=jnp.float32)
    out = jax.block_until_ready(fwd(x, params))
    ref = jax.block_until_ready(_reference_forward(x, params))
    assert out.shape == (2, 1, 16, 16)
    np.testing.assert_allclose(np.asarray(out), np.asarray(ref),
                               rtol=1e-4, atol=1e-4)

    # Larger batch exercises lane-axis image packing (B > 1 images per grid
    # step) and the per-image boundary masks.
    x8 = jax.random.normal(k_x, (8, 1, 16, 16), dtype=jnp.float32)
    out8 = jax.block_until_ready(fwd(x8, params))
    ref8 = jax.block_until_ready(_reference_forward(x8, params))
    np.testing.assert_allclose(np.asarray(out8), np.asarray(ref8),
                               rtol=1e-4, atol=1e-4)

    print("KERNEL_OK")
</pallas_src>

<mosaic_0001>
module attributes {stable_mosaic.version = 11 : i64} {
  func.func @kernel(%arg0: i32, %arg1: memref<1x256xf32, #tpu.memory_space<vmem>>, %arg2: memref<9x256xf32, #tpu.memory_space<vmem>>, %arg3: memref<24x9xf32, #tpu.memory_space<vmem>>, %arg4: memref<24x1xf32, #tpu.memory_space<vmem>>, %arg5: memref<24x216xf32, #tpu.memory_space<vmem>>, %arg6: memref<24x1xf32, #tpu.memory_space<vmem>>, %arg7: memref<9x24xf32, #tpu.memory_space<vmem>>, %arg8: memref<1x1xf32, #tpu.memory_space<vmem>>, %arg9: memref<1x256xf32, #tpu.memory_space<vmem>>, %arg10: memref<9x256xf32, #tpu.memory_space<vmem>>, %arg11: memref<216x256xf32, #tpu.memory_space<vmem>>) attributes {dimension_semantics = [#tpu.dimension_semantics<parallel>], iteration_bounds = array<i64: 2>, scalar_prefetch = 0 : i64, scratch_operands = 2 : i64, tpu.core_type = #tpu.core_type<tc>, window_params = [{transform_indices = @transform_0, window_bounds = array<i64: 1, 256>}, {pipeline_mode = #tpu.pipeline_mode<synchronous>, transform_indices = @transform_1, window_bounds = array<i64: 9, 256>}, {pipeline_mode = #tpu.pipeline_mode<synchronous>, transform_indices = @transform_2, window_bounds = array<i64: 24, 9>}, {pipeline_mode = #tpu.pipeline_mode<synchronous>, transform_indices = @transform_3, window_bounds = array<i64: 24, 1>}, {pipeline_mode = #tpu.pipeline_mode<synchronous>, transform_indices = @transform_4, window_bounds = array<i64: 24, 216>}, {pipeline_mode = #tpu.pipeline_mode<synchronous>, transform_indices = @transform_5, window_bounds = array<i64: 24, 1>}, {pipeline_mode = #tpu.pipeline_mode<synchronous>, transform_indices = @transform_6, window_bounds = array<i64: 9, 24>}, {pipeline_mode = #tpu.pipeline_mode<synchronous>, transform_indices = @transform_7, window_bounds = array<i64: 1, 1>}, {transform_indices = @transform_8, window_bounds = array<i64: 1, 256>}]} {
    %c0 = arith.constant 0 : index
    %c0_0 = arith.constant 0 : index
    %0 = vector.load %arg1[%c0, %c0_0] : memref<1x256xf32, #tpu.memory_space<vmem>>, vector<1x256xf32>
    %c17_i32 = arith.constant 17 : i32
    %1 = tpu.dynamic_rotate %0 by %c17_i32 dim 1 : vector<1x256xf32>, i32 -> vector<1x256xf32>
    %c0_1 = arith.constant 0 : index
    %c0_2 = arith.constant 0 : index
    %2 = vector.load %arg2[%c0_1, %c0_2] : memref<9x256xf32, #tpu.memory_space<vmem>>, vector<1x256xf32>
    %3 = arith.mulf %1, %2 : vector<1x256xf32>
    %c0_3 = arith.constant 0 : index
    %c0_4 = arith.constant 0 : index
    %4 = vector.load %arg10[%c0_3, %c0_4] : memref<9x256xf32, #tpu.memory_space<vmem>>, vector<1x256xf32>
    tpu.vector_store %arg10[%c0_3, %c0_4], %3 {strides = array<i32>} : memref<9x256xf32, #tpu.memory_space<vmem>>, vector<1x256xf32>,
    %c16_i32 = arith.constant 16 : i32
    %5 = tpu.dynamic_rotate %0 by %c16_i32 dim 1 : vector<1x256xf32>, i32 -> vector<1x256xf32>
    %c1 = arith.constant 1 : index
    %c0_5 = arith.constant 0 : index
    %6 = vector.load %arg2[%c1, %c0_5] : memref<9x256xf32, #tpu.memory_space<vmem>>, vector<1x256xf32>
    %7 = arith.mulf %5, %6 : vector<1x256xf32>
    %c1_6 = arith.constant 1 : index
    %c0_7 = arith.constant 0 : index
    %8 = vector.load %arg10[%c1_6, %c0_7] : memref<9x256xf32, #tpu.memory_space<vmem>>, vector<1x256xf32>
    tpu.vector_store %arg10[%c1_6, %c0_7], %7 {strides = array<i32>} : memref<9x256xf32, #tpu.memory_space<vmem>>, vector<1x256xf32>,
    %c15_i32 = arith.constant 15 : i32
    %9 = tpu.dynamic_rotate %0 by %c15_i32 dim 1 : vector<1x256xf32>, i32 -> vector<1x256xf32>
    %c2 = arith.constant 2 : index
    %c0_8 = arith.constant 0 : index
    %10 = vector.load %arg2[%c2, %c0_8] : memref<9x256xf32, #tpu.memory_space<vmem>>, vector<1x256xf32>
    %11 = arith.mulf %9, %10 : vector<1x256xf32>
    %c2_9 = arith.constant 2 : index
    %c0_10 = arith.constant 0 : index
    %12 = vector.load %arg10[%c2_9, %c0_10] : memref<9x256xf32, #tpu.memory_space<vmem>>, vector<1x256xf32>
    tpu.vector_store %arg10[%c2_9, %c0_10], %11 {strides = array<i32>} : memref<9x256xf32, #tpu.memory_space<vmem>>, vector<1x256xf32>,
    %c1_i32 = arith.constant 1 : i32
    %13 = tpu.dynamic_rotate %0 by %c1_i32 dim 1 : vector<1x256xf32>, i32 -> vector<1x256xf32>
    %c3 = arith.constant 3 : index
    %c0_11 = arith.constant 0 : index
    %14 = vector.load %arg2[%c3, %c0_11] : memref<9x256xf32, #tpu.memory_space<vmem>>, vector<1x256xf32>
    %15 = arith.mulf %13, %14 : vector<1x256xf32>
    %c3_12 = arith.constant 3 : index
    %c0_13 = arith.constant 0 : index
    %16 = vector.load %arg10[%c3_12, %c0_13] : memref<9x256xf32, #tpu.memory_space<vmem>>, vector<1x256xf32>
    tpu.vector_store %arg10[%c3_12, %c0_13], %15 {strides = array<i32>} : memref<9x256xf32, #tpu.memory_space<vmem>>, vector<1x256xf32>,
    %c4 = arith.constant 4 : index
    %c0_14 = arith.constant 0 : index
    %17 = vector.load %arg10[%c4, %c0_14] : memref<9x256xf32, #tpu.memory_space<vmem>>, vector<1x256xf32>
    tpu.vector_store %arg10[%c4, %c0_14], %0 {strides = array<i32>} : memref<9x256xf32, #tpu.memory_space<vmem>>, vector<1x256xf32>,
    %c255_i32 = arith.constant 255 : i32
    %18 = tpu.dynamic_rotate %0 by %c255_i32 dim 1 : vector<1x256xf32>, i32 -> vector<1x256xf32>
    %c5 = arith.constant 5 : index
    %c0_15 = arith.constant 0 : index
    %19 = vector.load %arg2[%c5, %c0_15] : memref<9x256xf32, #tpu.memory_space<vmem>>, vector<1x256xf32>
    %20 = arith.mulf %18, %19 : vector<1x256xf32>
    %c5_16 = arith.constant 5 : index
    %c0_17 = arith.constant 0 : index
    %21 = vector.load %arg10[%c5_16, %c0_17] : memref<9x256xf32, #tpu.memory_space<vmem>>, vector<1x256xf32>
    tpu.vector_store %arg10[%c5_16, %c0_17], %20 {strides = array<i32>} : memref<9x256xf32, #tpu.memory_space<vmem>>, vector<1x256xf32>,
    %c241_i32 = arith.constant 241 : i32
    %22 = tpu.dynamic_rotate %0 by %c241_i32 dim 1 : vector<1x256xf32>, i32 -> vector<1x256xf32>
    %c6 = arith.constant 6 : index
    %c0_18 = arith.constant 0 : index
    %23 = vector.load %arg2[%c6, %c0_18] : memref<9x256xf32, #tpu.memory_space<vmem>>, vector<1x256xf32>
    %24 = arith.mulf %22, %23 : vector<1x256xf32>
    %c6_19 = arith.constant 6 : index
    %c0_20 = arith.constant 0 : index
    %25 = vector.load %arg10[%c6_19, %c0_20] : memref<9x256xf32, #tpu.memory_space<vmem>>, vector<1x256xf32>
    tpu.vector_store %arg10[%c6_19, %c0_20], %24 {strides = array<i32>} : memref<9x256xf32, #tpu.memory_space<vmem>>, vector<1x256xf32>,
    %c240_i32 = arith.constant 240 : i32
    %26 = tpu.dynamic_rotate %0 by %c240_i32 dim 1 : vector<1x256xf32>, i32 -> vector<1x256xf32>
    %c7 = arith.constant 7 : index
    %c0_21 = arith.constant 0 : index
    %27 = vector.load %arg2[%c7, %c0_21] : memref<9x256xf32, #tpu.memory_space<vmem>>, vector<1x256xf32>
    %28 = arith.mulf %26, %27 : vector<1x256xf32>
    %c7_22 = arith.constant 7 : index
    %c0_23 = arith.constant 0 : index
    %29 = vector.load %arg10[%c7_22, %c0_23] : memref<9x256xf32, #tpu.memory_space<vmem>>, vector<1x256xf32>
    tpu.vector_store %arg10[%c7_22, %c0_23], %28 {strides = array<i32>} : memref<9x256xf32, #tpu.memory_space<vmem>>, vector<1x256xf32>,
    %c239_i32 = arith.constant 239 : i32
    %30 = tpu.dynamic_rotate %0 by %c239_i32 dim 1 : vector<1x256xf32>, i32 -> vector<1x256xf32>
    %c8 = arith.constant 8 : index
    %c0_24 = arith.constant 0 : index
    %31 = vector.load %arg2[%c8, %c0_24] : memref<9x256xf32, #tpu.memory_space<vmem>>, vector<1x256xf32>
    %32 = arith.mulf %30, %31 : vector<1x256xf32>
    %c8_25 = arith.constant 8 : index
    %c0_26 = arith.constant 0 : index
    %33 = vector.load %arg10[%c8_25, %c0_26] : memref<9x256xf32, #tpu.memory_space<vmem>>, vector<1x256xf32>
    tpu.vector_store %arg10[%c8_25, %c0_26], %32 {strides = array<i32>} : memref<9x256xf32, #tpu.memory_space<vmem>>, vector<1x256xf32>,
    %c0_27 = arith.constant 0 : index
    %c0_28 = arith.constant 0 : index
    %34 = vector.load %arg3[%c0_27, %c0_28] : memref<24x9xf32, #tpu.memory_space<vmem>>, vector<24x9xf32>
    %c0_29 = arith.constant 0 : index
    %c0_30 = arith.constant 0 : index
    %35 = vector.load %arg10[%c0_29, %c0_30] : memref<9x256xf32, #tpu.memory_space<vmem>>, vector<9x256xf32>
    %cst = arith.constant dense<0.000000e+00> : vector<24x256xf32>
    %36 = tpu.matmul %34, %35, %cst {dimension_numbers = #tpu.dot_dimension_numbers<[1], [0], [0], [1], [0, 0, 1, 1], [], []>} : vector<24x9xf32>, vector<9x256xf32>, vector<24x256xf32> -> vector<24x256xf32>
    %c0_31 = arith.constant 0 : index
    %c0_32 = arith.constant 0 : index
    %37 = vector.load %arg4[%c0_31, %c0_32] : memref<24x1xf32, #tpu.memory_space<vmem>>, vector<24x1xf32>
    %38 = vector.broadcast %37 : vector<24x1xf32> to vector<24x256xf32>
    %39 = arith.addf %36, %38 : vector<24x256xf32>
    %cst_33 = arith.constant 0.000000e+00 : f32
    %40 = vector.broadcast %cst_33 : f32 to vector<24x256xf32>
    %41 = arith.maximumf %39, %40 : vector<24x256xf32>
    %c17_i32_34 = arith.constant 17 : i32
    %42 = tpu.dynamic_rotate %41 by %c17_i32_34 dim 1 : vector<24x256xf32>, i32 -> vector<24x256xf32>
    %c0_35 = arith.constant 0 : index
    %c0_36 = arith.constant 0 : index
    %43 = vector.load %arg2[%c0_35, %c0_36] : memref<9x256xf32, #tpu.memory_space<vmem>>, vector<1x256xf32>
    %44 = vector.broadcast %43 : vector<1x256xf32> to vector<24x256xf32>
    %45 = arith.mulf %42, %44 : vector<24x256xf32>
    %c0_37 = arith.constant 0 : index
    %c0_38 = arith.constant 0 : index
    %46 = vector.load %arg11[%c0_37, %c0_38] : memref<216x256xf32, #tpu.memory_space<vmem>>, vector<24x256xf32>
    tpu.vector_store %arg11[%c0_37, %c0_38], %45 {strides = array<i32>} : memref<216x256xf32, #tpu.memory_space<vmem>>, vector<24x256xf32>,
    %c16_i32_39 = arith.constant 16 : i32
    %47 = tpu.dynamic_rotate %41 by %c16_i32_39 dim 1 : vector<24x256xf32>, i32 -> vector<24x256xf32>
    %c1_40 = arith.constant 1 : index
    %c0_41 = arith.constant 0 : index
    %48 = vector.load %arg2[%c1_40, %c0_41] : memref<9x256xf32, #tpu.memory_space<vmem>>, vector<1x256xf32>
    %49 = vector.broadcast %48 : vector<1x256xf32> to vector<24x256xf32>
    %50 = arith.mulf %47, %49 : vector<24x256xf32>
    %c24 = arith.constant 24 : index
    %c0_42 = arith.constant 0 : index
    %51 = vector.load %arg11[%c24, %c0_42] : memref<216x256xf32, #tpu.memory_space<vmem>>, vector<24x256xf32>
    tpu.vector_store %arg11[%c24, %c0_42], %50 {strides = array<i32>} : memref<216x256xf32, #tpu.memory_space<vmem>>, vector<24x256xf32>,
    %c15_i32_43 = arith.constant 15 : i32
    %52 = tpu.dynamic_rotate %41 by %c15_i32_43 dim 1 : vector<24x256xf32>, i32 -> vector<24x256xf32>
    %c2_44 = arith.constant 2 : index
    %c0_45 = arith.constant 0 : index
    %53 = vector.load %arg2[%c2_44, %c0_45] : memref<9x256xf32, #tpu.memory_space<vmem>>, vector<1x256xf32>
    %54 = vector.broadcast %53 : vector<1x256xf32> to vector<24x256xf32>
    %55 = arith.mulf %52, %54 : vector<24x256xf32>
    %c48 = arith.constant 48 : index
    %c0_46 = arith.constant 0 : index
    %56 = vector.load %arg11[%c48, %c0_46] : memref<216x256xf32, #tpu.memory_space<vmem>>, vector<24x256xf32>
    tpu.vector_store %arg11[%c48, %c0_46], %55 {strides = array<i32>} : memref<216x256xf32, #tpu.memory_space<vmem>>, vector<24x256xf32>,
    %c1_i32_47 = arith.constant 1 : i32
    %57 = tpu.dynamic_rotate %41 by %c1_i32_47 dim 1 : vector<24x256xf32>, i32 -> vector<24x256xf32>
    %c3_48 = arith.constant 3 : index
    %c0_49 = arith.constant 0 : index
    %58 = vector.load %arg2[%c3_48, %c0_49] : memref<9x256xf32, #tpu.memory_space<vmem>>, vector<1x256xf32>
    %59 = vector.broadcast %58 : vector<1x256xf32> to vector<24x256xf32>
    %60 = arith.mulf %57, %59 : vector<24x256xf32>
    %c72 = arith.constant 72 : index
    %c0_50 = arith.constant 0 : index
    %61 = vector.load %arg11[%c72, %c0_50] : memref<216x256xf32, #tpu.memory_space<vmem>>, vector<24x256xf32>
    tpu.vector_store %arg11[%c72, %c0_50], %60 {strides = array<i32>} : memref<216x256xf32, #tpu.memory_space<vmem>>, vector<24x256xf32>,
    %c96 = arith.constant 96 : index
    %c0_51 = arith.constant 0 : index
    %62 = vector.load %arg11[%c96, %c0_51] : memref<216x256xf32, #tpu.memory_space<vmem>>, vector<24x256xf32>
    tpu.vector_store %arg11[%c96, %c0_51], %41 {strides = array<i32>} : memref<216x256xf32, #tpu.memory_space<vmem>>, vector<24x256xf32>,
    %c255_i32_52 = arith.constant 255 : i32
    %63 = tpu.dynamic_rotate %41 by %c255_i32_52 dim 1 : vector<24x256xf32>, i32 -> vector<24x256xf32>
    %c5_53 = arith.constant 5 : index
    %c0_54 = arith.constant 0 : index
    %64 = vector.load %arg2[%c5_53, %c0_54] : memref<9x256xf32, #tpu.memory_space<vmem>>, vector<1x256xf32>
    %65 = vector.broadcast %64 : vector<1x256xf32> to vector<24x256xf32>
    %66 = arith.mulf %63, %65 : vector<24x256xf32>
    %c120 = arith.constant 120 : index
    %c0_55 = arith.constant 0 : index
    %67 = vector.load %arg11[%c120, %c0_55] : memref<216x256xf32, #tpu.memory_space<vmem>>, vector<24x256xf32>
    tpu.vector_store %arg11[%c120, %c0_55], %66 {strides = array<i32>} : memref<216x256xf32, #tpu.memory_space<vmem>>, vector<24x256xf32>,
    %c241_i32_56 = arith.constant 241 : i32
    %68 = tpu.dynamic_rotate %41 by %c241_i32_56 dim 1 : vector<24x256xf32>, i32 -> vector<24x256xf32>
    %c6_57 = arith.constant 6 : index
    %c0_58 = arith.constant 0 : index
    %69 = vector.load %arg2[%c6_57, %c0_58] : memref<9x256xf32, #tpu.memory_space<vmem>>, vector<1x256xf32>
    %70 = vector.broadcast %69 : vector<1x256xf32> to vector<24x256xf32>
    %71 = arith.mulf %68, %70 : vector<24x256xf32>
    %c144 = arith.constant 144 : index
    %c0_59 = arith.constant 0 : index
    %72 = vector.load %arg11[%c144, %c0_59] : memref<216x256xf32, #tpu.memory_space<vmem>>, vector<24x256xf32>
    tpu.vector_store %arg11[%c144, %c0_59], %71 {strides = array<i32>} : memref<216x256xf32, #tpu.memory_space<vmem>>, vector<24x256xf32>,
    %c240_i32_60 = arith.constant 240 : i32
    %73 = tpu.dynamic_rotate %41 by %c240_i32_60 dim 1 : vector<24x256xf32>, i32 -> vector<24x256xf32>
    %c7_61 = arith.constant 7 : index
    %c0_62 = arith.constant 0 : index
    %74 = vector.load %arg2[%c7_61, %c0_62] : memref<9x256xf32, #tpu.memory_space<vmem>>, vector<1x256xf32>
    %75 = vector.broadcast %74 : vector<1x256xf32> to vector<24x256xf32>
    %76 = arith.mulf %73, %75 : vector<24x256xf32>
    %c168 = arith.constant 168 : index
    %c0_63 = arith.constant 0 : index
    %77 = vector.load %arg11[%c168, %c0_63] : memref<216x256xf32, #tpu.memory_space<vmem>>, vector<24x256xf32>
    tpu.vector_store %arg11[%c168, %c0_63], %76 {strides = array<i32>} : memref<216x256xf32, #tpu.memory_space<vmem>>, vector<24x256xf32>,
    %c239_i32_64 = arith.constant 239 : i32
    %78 = tpu.dynamic_rotate %41 by %c239_i32_64 dim 1 : vector<24x256xf32>, i32 -> vector<24x256xf32>
    %c8_65 = arith.constant 8 : index
    %c0_66 = arith.constant 0 : index
    %79 = vector.load %arg2[%c8_65, %c0_66] : memref<9x256xf32, #tpu.memory_space<vmem>>, vector<1x256xf32>
    %80 = vector.broadcast %79 : vector<1x256xf32> to vector<24x256xf32>
    %81 = arith.mulf %78, %80 : vector<24x256xf32>
    %c192 = arith.constant 192 : index
    %c0_67 = arith.constant 0 : index
    %82 = vector.load %arg11[%c192, %c0_67] : memref<216x256xf32, #tpu.memory_space<vmem>>, vector<24x256xf32>
    tpu.vector_store %arg11[%c192, %c0_67], %81 {strides = array<i32>} : memref<216x256xf32, #tpu.memory_space<vmem>>, vector<24x256xf32>,
    %c0_68 = arith.constant 0 : index
    %c0_69 = arith.constant 0 : index
    %83 = vector.load %arg5[%c0_68, %c0_69] : memref<24x216xf32, #tpu.memory_space<vmem>>, vector<24x216xf32>
    %c0_70 = arith.constant 0 : index
    %c0_71 = arith.constant 0 : index
    %84 = vector.load %arg11[%c0_70, %c0_71] : memref<216x256xf32, #tpu.memory_space<vmem>>, vector<216x256xf32>
    %cst_72 = arith.constant dense<0.000000e+00> : vector<24x256xf32>
    %85 = tpu.matmul %83, %84, %cst_72 {dimension_numbers = #tpu.dot_dimension_numbers<[1], [0], [0], [1], [0, 0, 1, 1], [], []>} : vector<24x216xf32>, vector<216x256xf32>, vector<24x256xf32> -> vector<24x256xf32>
    %c0_73 = arith.constant 0 : index
    %c0_74 = arith.constant 0 : index
    %86 = vector.load %arg6[%c0_73, %c0_74] : memref<24x1xf32, #tpu.memory_space<vmem>>, vector<24x1xf32>
    %87 = vector.broadcast %86 : vector<24x1xf32> to vector<24x256xf32>
    %88 = arith.addf %85, %87 : vector<24x256xf32>
    %cst_75 = arith.constant 0.000000e+00 : f32
    %89 = vector.broadcast %cst_75 : f32 to vector<24x256xf32>
    %90 = arith.maximumf %88, %89 : vector<24x256xf32>
    %c0_76 = arith.constant 0 : index
    %c0_77 = arith.constant 0 : index
    %91 = vector.load %arg7[%c0_76, %c0_77] : memref<9x24xf32, #tpu.memory_space<vmem>>, vector<9x24xf32>
    %cst_78 = arith.constant dense<0.000000e+00> : vector<9x256xf32>
    %92 = tpu.matmul %91, %90, %cst_78 {dimension_numbers = #tpu.dot_dimension_numbers<[1], [0], [0], [1], [0, 0, 1, 1], [], []>} : vector<9x24xf32>, vector<24x256xf32>, vector<9x256xf32> -> vector<9x256xf32>
    %c0_79 = arith.constant 0 : index
    %c0_80 = arith.constant 0 : index
    %93 = vector.load %arg10[%c0_79, %c0_80] : memref<9x256xf32, #tpu.memory_space<vmem>>, vector<9x256xf32>
    tpu.vector_store %arg10[%c0_79, %c0_80], %92 {strides = array<i32>} : memref<9x256xf32, #tpu.memory_space<vmem>>, vector<9x256xf32>,
    %c0_81 = arith.constant 0 : index
    %c0_82 = arith.constant 0 : index
    %94 = vector.load %arg10[%c0_81, %c0_82] : memref<9x256xf32, #tpu.memory_space<vmem>>, vector<1x256xf32>
    %c17_i32_83 = arith.constant 17 : i32
    %95 = tpu.dynamic_rotate %94 by %c17_i32_83 dim 1 : vector<1x256xf32>, i32 -> vector<1x256xf32>
    %c0_84 = arith.constant 0 : index
    %c0_85 = arith.constant 0 : index
    %96 = vector.load %arg2[%c0_84, %c0_85] : memref<9x256xf32, #tpu.memory_space<vmem>>, vector<1x256xf32>
    %97 = arith.mulf %95, %96 : vector<1x256xf32>
    %c1_86 = arith.constant 1 : index
    %c0_87 = arith.constant 0 : index
    %98 = vector.load %arg10[%c1_86, %c0_87] : memref<9x256xf32, #tpu.memory_space<vmem>>, vector<1x256xf32>
    %c16_i32_88 = arith.constant 16 : i32
    %99 = tpu.dynamic_rotate %98 by %c16_i32_88 dim 1 : vector<1x256xf32>, i32 -> vector<1x256xf32>
    %c1_89 = arith.constant 1 : index
    %c0_90 = arith.constant 0 : index
    %100 = vector.load %arg2[%c1_89, %c0_90] : memref<9x256xf32, #tpu.memory_space<vmem>>, vector<1x256xf32>
    %101 = arith.mulf %99, %100 : vector<1x256xf32>
    %102 = arith.addf %97, %101 : vector<1x256xf32>
    %c2_91 = arith.constant 2 : index
    %c0_92 = arith.constant 0 : index
    %103 = vector.load %arg10[%c2_91, %c0_92] : memref<9x256xf32, #tpu.memory_space<vmem>>, vector<1x256xf32>
    %c15_i32_93 = arith.constant 15 : i32
    %104 = tpu.dynamic_rotate %103 by %c15_i32_93 dim 1 : vector<1x256xf32>, i32 -> vector<1x256xf32>
    %c2_94 = arith.constant 2 : index
    %c0_95 = arith.constant 0 : index
    %105 = vector.load %arg2[%c2_94, %c0_95] : memref<9x256xf32, #tpu.memory_space<vmem>>, vector<1x256xf32>
    %106 = arith.mulf %104, %105 : vector<1x256xf32>
    %107 = arith.addf %102, %106 : vector<1x256xf32>
    %c3_96 = arith.constant 3 : index
    %c0_97 = arith.constant 0 : index
    %108 = vector.load %arg10[%c3_96, %c0_97] : memref<9x256xf32, #tpu.memory_space<vmem>>, vector<1x256xf32>
    %c1_i32_98 = arith.constant 1 : i32
    %109 = tpu.dynamic_rotate %108 by %c1_i32_98 dim 1 : vector<1x256xf32>, i32 -> vector<1x256xf32>
    %c3_99 = arith.constant 3 : index
    %c0_100 = arith.constant 0 : index
    %110 = vector.load %arg2[%c3_99, %c0_100] : memref<9x256xf32, #tpu.memory_space<vmem>>, vector<1x256xf32>
    %111 = arith.mulf %109, %110 : vector<1x256xf32>
    %112 = arith.addf %107, %111 : vector<1x256xf32>
    %c4_101 = arith.constant 4 : index
    %c0_102 = arith.constant 0 : index
    %113 = vector.load %arg10[%c4_101, %c0_102] : memref<9x256xf32, #tpu.memory_space<vmem>>, vector<1x256xf32>
    %114 = arith.addf %112, %113 : vector<1x256xf32>
    %c5_103 = arith.constant 5 : index
    %c0_104 = arith.constant 0 : index
    %115 = vector.load %arg10[%c5_103, %c0_104] : memref<9x256xf32, #tpu.memory_space<vmem>>, vector<1x256xf32>
    %c255_i32_105 = arith.constant 255 : i32
    %116 = tpu.dynamic_rotate %115 by %c255_i32_105 dim 1 : vector<1x256xf32>, i32 -> vector<1x256xf32>
    %c5_106 = arith.constant 5 : index
    %c0_107 = arith.constant 0 : index
    %117 = vector.load %arg2[%c5_106, %c0_107] : memref<9x256xf32, #tpu.memory_space<vmem>>, vector<1x256xf32>
    %118 = arith.mulf %116, %117 : vector<1x256xf32>
    %119 = arith.addf %114, %118 : vector<1x256xf32>
    %c6_108 = arith.constant 6 : index
    %c0_109 = arith.constant 0 : index
    %120 = vector.load %arg10[%c6_108, %c0_109] : memref<9x256xf32, #tpu.memory_space<vmem>>, vector<1x256xf32>
    %c241_i32_110 = arith.constant 241 : i32
    %121 = tpu.dynamic_rotate %120 by %c241_i32_110 dim 1 : vector<1x256xf32>, i32 -> vector<1x256xf32>
    %c6_111 = arith.constant 6 : index
    %c0_112 = arith.constant 0 : index
    %122 = vector.load %arg2[%c6_111, %c0_112] : memref<9x256xf32, #tpu.memory_space<vmem>>, vector<1x256xf32>
    %123 = arith.mulf %121, %122 : vector<1x256xf32>
    %124 = arith.addf %119, %123 : vector<1x256xf32>
    %c7_113 = arith.constant 7 : index
    %c0_114 = arith.constant 0 : index
    %125 = vector.load %arg10[%c7_113, %c0_114] : memref<9x256xf32, #tpu.memory_space<vmem>>, vector<1x256xf32>
    %c240_i32_115 = arith.constant 240 : i32
    %126 = tpu.dynamic_rotate %125 by %c240_i32_115 dim 1 : vector<1x256xf32>, i32 -> vector<1x256xf32>
    %c7_116 = arith.constant 7 : index
    %c0_117 = arith.constant 0 : index
    %127 = vector.load %arg2[%c7_116, %c0_117] : memref<9x256xf32, #tpu.memory_space<vmem>>, vector<1x256xf32>
    %128 = arith.mulf %126, %127 : vector<1x256xf32>
    %129 = arith.addf %124, %128 : vector<1x256xf32>
    %c8_118 = arith.constant 8 : index
    %c0_119 = arith.constant 0 : index
    %130 = vector.load %arg10[%c8_118, %c0_119] : memref<9x256xf32, #tpu.memory_space<vmem>>, vector<1x256xf32>
    %c239_i32_120 = arith.constant 239 : i32
    %131 = tpu.dynamic_rotate %130 by %c239_i32_120 dim 1 : vector<1x256xf32>, i32 -> vector<1x256xf32>
    %c8_121 = arith.constant 8 : index
    %c0_122 = arith.constant 0 : index
    %132 = vector.load %arg2[%c8_121, %c0_122] : memref<9x256xf32, #tpu.memory_space<vmem>>, vector<1x256xf32>
    %133 = arith.mulf %131, %132 : vector<1x256xf32>
    %134 = arith.addf %129, %133 : vector<1x256xf32>
    %c0_123 = arith.constant 0 : index
    %c0_124 = arith.constant 0 : index
    %135 = vector.load %arg8[%c0_123, %c0_124] : memref<1x1xf32, #tpu.memory_space<vmem>>, vector<1x1xf32>
    %136 = vector.broadcast %135 : vector<1x1xf32> to vector<1x256xf32>
    %137 = arith.addf %134, %136 : vector<1x256xf32>
    %c0_125 = arith.constant 0 : index
    %c0_126 = arith.constant 0 : index
    %138 = vector.load %arg9[%c0_125, %c0_126] : memref<1x256xf32, #tpu.memory_space<vmem>>, vector<1x256xf32>
    tpu.vector_store %arg9[%c0_125, %c0_126], %137 {strides = array<i32>} : memref<1x256xf32, #tpu.memory_space<vmem>>, vector<1x256xf32>,
    return
  }
  func.func @transform_0(%arg0: i32) -> (i32, i32) {
    %c0_i32 = arith.constant 0 : i32
    %c0_i32_0 = arith.constant 0 : i32
    return %c0_i32, %arg0 : i32, i32
  }
  func.func @transform_1(%arg0: i32) -> (i32, i32) {
    %c0_i32 = arith.constant 0 : i32
    %c0_i32_0 = arith.constant 0 : i32
    %c0_i32_1 = arith.constant 0 : i32
    return %c0_i32, %c0_i32_0 : i32, i32
  }
  func.func @transform_2(%arg0: i32) -> (i32, i32) {
    %c0_i32 = arith.constant 0 : i32
    %c0_i32_0 = arith.constant 0 : i32
    %c0_i32_1 = arith.constant 0 : i32
    return %c0_i32, %c0_i32_0 : i32, i32
  }
  func.func @transform_3(%arg0: i32) -> (i32, i32) {
    %c0_i32 = arith.constant 0 : i32
    %c0_i32_0 = arith.constant 0 : i32
    %c0_i32_1 = arith.constant 0 : i32
    return %c0_i32, %c0_i32_0 : i32, i32
  }
  func.func @transform_4(%arg0: i32) -> (i32, i32) {
    %c0_i32 = arith.constant 0 : i32
    %c0_i32_0 = arith.constant 0 : i32
    %c0_i32_1 = arith.constant 0 : i32
    return %c0_i32, %c0_i32_0 : i32, i32
  }
  func.func @transform_5(%arg0: i32) -> (i32, i32) {
    %c0_i32 = arith.constant 0 : i32
    %c0_i32_0 = arith.constant 0 : i32
    %c0_i32_1 = arith.constant 0 : i32
    return %c0_i32, %c0_i32_0 : i32, i32
  }
  func.func @transform_6(%arg0: i32) -> (i32, i32) {
    %c0_i32 = arith.constant 0 : i32
    %c0_i32_0 = arith.constant 0 : i32
    %c0_i32_1 = arith.constant 0 : i32
    return %c0_i32, %c0_i32_0 : i32, i32
  }
  func.func @transform_7(%arg0: i32) -> (i32, i32) {
    %c0_i32 = arith.constant 0 : i32
    %c0_i32_0 = arith.constant 0 : i32
    %c0_i32_1 = arith.constant 0 : i32
    return %c0_i32, %c0_i32_0 : i32, i32
  }
  func.func @transform_8(%arg0: i32) -> (i32, i32) {
    %c0_i32 = arith.constant 0 : i32
    %c0_i32_0 = arith.constant 0 : i32
    return %c0_i32, %arg0 : i32, i32
  }
}

</mosaic_0001>

<bundles_post_ra>
// kernel: dqn_forward.1
= control target key start
LH: loop header
LB: loop body
LE: loop exit
PB: predicated region body
PF: predicated region fallthrough
CT: control target
= control target key end

     0   :  { %s1963_s29 = smov 0   ;;  %s2595_s0 = inlined_call_operand.vmem [shape: f32[1,512], index: 0, kind: input, shape index: {}]   ;;  %s2596_s1 = inlined_call_operand.vmem [shape: f32[9,256], index: 1, kind: input, shape index: {}]   ;;  %s2597_s2 = inlined_call_operand.vmem [shape: f32[24,9], index: 2, kind: input, shape index: {}]   ;;  %s2598_s3 = inlined_call_operand.vmem [shape: f32[24,1], index: 3, kind: input, shape index: {}]   ;;  %s2599_s4 = inlined_call_operand.vmem [shape: f32[24,216], index: 4, kind: input, shape index: {}]   ;;  %s2600_s5 = inlined_call_operand.vmem [shape: f32[24,1], index: 5, kind: input, shape index: {}]   ;;  %s2601_s6 = inlined_call_operand.vmem [shape: f32[9,24], index: 6, kind: input, shape index: {}]   ;;  %s2602_s7 = inlined_call_operand.<no memory space> [shape: f32[1,1], index: 7, kind: input, shape index: {}]   ;;  %s2603_s8 = inlined_call_operand.vmem [shape: f32[1,512], index: 8, kind: output, shape index: {}]  }
   0x1   :  { %v13_v0 = vstv %s2602_s7 }
   0x2   :  { %14 = vst [vmem:[#allocation4] sm:$0x1] %v13_v0 }
   0x3 LB: > { %s1771_s30 = sadd.s32 4294967295, %s1901_s29   ;;  %p1775_p0 = scmp.ge.s32.totalorder %s1901_s29, 1  ;;  %s1901_s29 = sphi %s1963_s29, %s20_s29  }
   0x4   : > { %p264_p1 = scmp.lt.s32.totalorder %s1901_s29, 3 }
   0x6   : > { %p265_p2 = pnand %p1775_p0, %p264_p1 }
   0x7   : > { %s1776_s9 = sshll.u32 (!%p265_p2), %s1771_s30, 1  ;;  %v308_v1 = vlaneseq (!%p265_p2)  ;;  %s1903_s12 = smov (!%p265_p2), 16   ;;  %v1911_v9 = vmov (!%p265_p2), 0.0   ;;  %v676_v10 = vld [vmem:[%s2598_s3] sm:$0xff] (!%p265_p2)  ;;  %v677_v11 = vld [vmem:[%s2598_s3 + $0x8] sm:$0xff] (!%p265_p2)  ;;  %v1912_v12 = vmov (!%p265_p2), 0  }
   0x8   : > { %268 = sbr.rel (%p265_p2) target bundleno = 1226 (0x4ca), region = 52  ;;  %p297_p3 = scmp.lt.s32.totalorder (!%p265_p2), %s1776_s9, 3  ;;  %775 = vmatprep.mubr.f32.mxu0 (!%p265_p2), %v1911_v9  ;;  %1893 = vset.pattern.permute.xlu0 (!%p265_p2), %v1912_v12  ;;  %v678_v13 = vld [vmem:[%s2598_s3 + $0x10] sm:$0xff] (!%p265_p2)  ;;  %v1913_v14 = vmov (!%p265_p2), 1966171168   ;;  %vm704_vm9 = vcmask (!%p265_p2), 1040384  }
   0x9   : > { %v309_v2 = vshrl.u32 (!%p265_p2), %v308_v1, 7  ;;  %vm1981_vm0 = vcmp.lt.s32.totalorder (!%p265_p2), %v308_v1, 256  ;;  %s1904_s13 = smov (!%p265_p2), 17   ;;  %s1905_s14 = smov (!%p265_p2), 15   ;;  %1894 = vset.pattern.permute.xlu1 (!%p265_p2), %v1912_v12  ;;  %v345_v15 = vunpack.c.l.s4 (!%p265_p2), %v1913_v14  ;;  %v2015_v16 = vand.u32 (!%p265_p2), 127, %v308_v1 }
   0xa   : > { %s1906_s15 = smov (!%p265_p2), 1   ;;  %s1907_s16 = smov (!%p265_p2), 127   ;;  %v1778_v17 = vld [vmem:[%s2596_s1 + $0x1] ss:$8 sm:$0x3] (!%p265_p2)  ;;  %vm1914_vm10 = vmmov (!%p265_p2), 1  }
   0xb   : > { %v1973_v3 = vsub.s32 (!%p265_p2), 0, %v309_v2  ;;  %v1979_v4 = vsub.s32 (!%p265_p2), 1, %v309_v2  ;;  %s1908_s17 = smov (!%p265_p2), 113   ;;  %s1909_s18 = smov (!%p265_p2), 112   ;;  %v346_v21 = vunpack.c.0.s8 (!%p265_p2), %v345_v15  ;;  %vm369_vm1 = vcmp.lt.s32.totalorder (!%p265_p2), %v2015_v16, 16  ;;  %vm1812_vm11 = vmpackc.low (!%p265_p2), %vm704_vm9, %vm1914_vm10 }
   0xc   : > { %s1910_s19 = smov (!%p265_p2), 111   ;;  %v327_v18 = vld [vmem:[%s2596_s1] ss:$8 sm:$0x3] (!%p265_p2)  ;;  %vm324_vm2 = vcmp.lt.s32.totalorder (!%p265_p2), %v2015_v16, 17  ;;  %vm412_vm3 = vcmp.lt.s32.totalorder (!%p265_p2), %v2015_v16, 15 }
   0xd   : > { %v1779_v22 = vld [vmem:[%s2596_s1 + $0x2] ss:$8 sm:$0x3] (!%p265_p2)  ;;  %v378_v23 = vrot.slane (!%p265_p2), %v1778_v17, %v1973_v3  ;;  %v382_v24 = vrot.slane (!%p265_p2), %v1778_v17, %v1979_v4  ;;  %v332_v25 = vrot.slane (!%p265_p2), %v327_v18, %v1973_v3  ;;  %v336_v26 = vrot.slane (!%p265_p2), %v327_v18, %v1979_v4  ;;  %v1780_v40 = vld [vmem:[%s2596_s1 + $0x3] ss:$8 sm:$0x3] (!%p265_p2) }
   0xe   : > { %v2032_v27 = vsub.s32 (!%p265_p2), %v346_v21, %v309_v2  ;;  %v421_v30 = vrot.slane (!%p265_p2), %v1779_v22, %v1973_v3  ;;  %v425_v31 = vrot.slane (!%p265_p2), %v1779_v22, %v1979_v4  ;;  %vm455_vm4 = vcmp.lt.s32.totalorder (!%p265_p2), %v2015_v16, 1  ;;  %v1781_v53 = vld [vmem:[%s2596_s1 + $0x5] ss:$8 sm:$0x3] (!%p265_p2) }
   0xf   : > { %s2607_s9 = smov (!%p297_p3, %s1776_s9), 3  ;;  %v464_v47 = vrot.slane %v1780_v40, %v1973_v3  ;;  %v468_v48 = vrot.slane %v1780_v40, %v1979_v4  ;;  %vm501_vm5 = vcmp.lt.s32.totalorder %v2015_v16, 127  ;;  %v510_v61 = vrot.slane %v1781_v53, %v1973_v3  ;;  %v1782_v2 = vld [vmem:[%s2596_s1 + $0x6] ss:$8 sm:$0x3] }
  0x10   : > { %s299_s11 = scalar_lea.vmem %s2595_s0, %s2607_s9  ;;  %v514_v1 = vrot.slane %v1781_v53, %v1979_v4  ;;  %vm544_vm6 = vcmp.lt.s32.totalorder %v2015_v16, 113  ;;  %v557_v18 = vrot.slane %v1782_v2, %v1979_v4  ;;  %vm587_vm7 = vcmp.lt.s32.totalorder %v2015_v16, 112  ;;  %s304_s10 = scalar_lea.vmem %s2603_s8, %s2607_s9 }
  0x11   : > { %v306_v5 = vld [vmem:[%s299_s11] sm:$0x3]  ;;  %vm630_vm8 = vcmp.lt.s32.totalorder %v2015_v16, 111  ;;  %vm694_vm12 = vcmask 72704   ;;  %vm1220_vm13 = vcmask 719872   ;;  %vm1321_vm14 = vcmask 195584  }
  0x12   : > { %v311_v7 = vrot.slane %v306_v5, %v1973_v3  ;;  %495 = vst.msk [vmem:[#allocation2 + $0x4] ss:$8 sm:$0x3] %vm1981_vm0, %v306_v5  ;;  %v315_v8 = vrot.slane %v306_v5, %v1979_v4 }
  0x14   : > { %365 = vrot.lane.b32.xlu1 %v311_v7, %s1903_s12  ;;  %318 = vrot.lane.b32.xlu0 %v311_v7, %s1904_s13 }
  0x18   : > { %367 = vrot.lane.b32.xlu1 %v315_v8, %s1903_s12  ;;  %320 = vrot.lane.b32.xlu0 %v315_v8, %s1904_s13 }
  0x1c   : > { %410 = vrot.lane.b32.xlu1 %v315_v8, %s1905_s14  ;;  %408 = vrot.lane.b32.xlu0 %v311_v7, %s1905_s14 }
  0x20   : > { %453 = vrot.lane.b32.xlu1 %v315_v8, %s1906_s15  ;;  %451 = vrot.lane.b32.xlu0 %v311_v7, %s1906_s15 }
  0x24   : > { %499 = vrot.lane.b32.xlu1 %v315_v8, %s1907_s16  ;;  %497 = vrot.lane.b32.xlu0 %v311_v7, %s1907_s16 }
  0x28   : > { %542 = vrot.lane.b32.xlu1 %v315_v8, %s1908_s17  ;;  %540 = vrot.lane.b32.xlu0 %v311_v7, %s1908_s17 }
  0x2c   : > { %585 = vrot.lane.b32.xlu1 %v315_v8, %s1909_s18  ;;  %583 = vrot.lane.b32.xlu0 %v311_v7, %s1909_s18 }
  0x30   : > { %628 = vrot.lane.b32.xlu1 %v315_v8, %s1910_s19  ;;  %626 = vrot.lane.b32.xlu0 %v311_v7, %s1910_s19 }
  0x34   : > { %681 = vperm.xlu0 %1893, %v676_v10   ;;  %686 = vperm.xlu1 %1894, %v677_v11  }
  0x38   : > { %691 = vperm.xlu1 %1894, %v678_v13   ;;  %v553_v13 = vrot.slane %v1782_v2, %v1973_v3 }
  0x86   : > { %v366_v19 = vpop.permute.xlu1 %365  ;;  %v319_v20 = vpop.permute.xlu0 %318 }
  0x8a   : > { %v368_v28 = vpop.permute.xlu1 %367  ;;  %v321_v29 = vpop.permute.xlu0 %320 }
  0x8b   : > { %v370_v32 = vsel %vm369_vm1, %v366_v19, %v368_v28  ;;  %v371_v33 = vsel %vm369_vm1, %v368_v28, %v366_v19  ;;  %v325_v34 = vsel %vm324_vm2, %v319_v20, %v321_v29  ;;  %v326_v35 = vsel %vm324_vm2, %v321_v29, %v319_v20  ;;  %v1783_v19 = vld [vmem:[%s2596_s1 + $0x7] ss:$8 sm:$0x3] }
  0x8c   : > { %v385_v36 = vmul.f32 %v378_v23, %v371_v33  ;;  %v386_v37 = vmul.f32 %v382_v24, %v370_v32  ;;  %v339_v38 = vmul.f32 %v332_v25, %v326_v35  ;;  %v340_v39 = vmul.f32 %v336_v26, %v325_v34  ;;  %v1784_v32 = vld [vmem:[%s2596_s1 + $0x10] ss:$8 sm:$0x3] }
  0x8d   : > { %v596_v26 = vrot.slane %v1783_v19, %v1973_v3 }
  0x8e   : > { %v389_v41 = vcombine.low %v385_v36, %v386_v37  ;;  %v343_v42 = vcombine.low %v339_v38, %v340_v39  ;;  %v411_v43 = vpop.permute.xlu1 %410  ;;  %v409_v44 = vpop.permute.xlu0 %408  ;;  %v639_v39 = vrot.slane %v1784_v32, %v1973_v3 }
  0x8f   : > { %v413_v45 = vsel %vm412_vm3, %v409_v44, %v411_v43  ;;  %v414_v46 = vsel %vm412_vm3, %v411_v43, %v409_v44  ;;  %v643_v43 = vrot.slane %v1784_v32, %v1979_v4  ;;  %v1204_v32 = vld [vmem:[%s2600_s5 + $0x10] sm:$0xff] }
  0x90   : > { %v396_v49 = vrot.slane %v389_v41, %v2032_v27  ;;  %v350_v50 = vrot.slane %v343_v42, %v2032_v27  ;;  %v428_v51 = vmul.f32 %v421_v30, %v414_v46  ;;  %v429_v52 = vmul.f32 %v425_v31, %v413_v45 }
  0x91   : > { %v600_v31 = vrot.slane %v1783_v19, %v1979_v4 }
  0x92   : > { %v403_v54 = vrot.slane %v396_v49, %v2032_v27  ;;  %v357_v55 = vrot.slane %v350_v50, %v2032_v27  ;;  %v432_v56 = vcombine.low %v428_v51, %v429_v52  ;;  %v454_v57 = vpop.permute.xlu1 %453  ;;  %v452_v58 = vpop.permute.xlu0 %451 }
  0x93   : > { %v456_v59 = vsel %vm455_vm4, %v452_v58, %v454_v57  ;;  %v457_v60 = vsel %vm455_vm4, %v454_v57, %v452_v58 }
  0x94   : > { %406 = vst.msk [vmem:[#allocation2 + $0x1] ss:$8 sm:$0x3] %vm1981_vm0, %v403_v54  ;;  %363 = vst.msk [vmem:[#allocation2] ss:$8 sm:$0x3] %vm1981_vm0, %v357_v55  ;;  %v439_v62 = vrot.slane %v432_v56, %v2032_v27  ;;  %v471_v63 = vmul.f32 %v464_v47, %v457_v60  ;;  %v472_v0 = vmul.f32 %v468_v48, %v456_v59 }
  0x96   : > { %v446_v5 = vrot.slane %v439_v62, %v2032_v27  ;;  %v475_v7 = vcombine.low %v471_v63, %v472_v0  ;;  %v500_v8 = vpop.permute.xlu1 %499  ;;  %v498_v10 = vpop.permute.xlu0 %497  ;;  %v669_v63 = vld [vmem:[%s2597_s2] sm:$0xff]  ;;  %v670_v0 = vld [vmem:[%s2597_s2 + $0x8] sm:$0xff] }
  0x97   : > { %v502_v11 = vsel %vm501_vm5, %v498_v10, %v500_v8  ;;  %v503_v12 = vsel %vm501_vm5, %v500_v8, %v498_v10 }
  0x98   : > { %449 = vst.msk [vmem:[#allocation2 + $0x2] ss:$8 sm:$0x3] %vm1981_vm0, %v446_v5  ;;  %v482_v14 = vrot.slane %v475_v7, %v2032_v27  ;;  %v517_v15 = vmul.f32 %v510_v61, %v502_v11  ;;  %v518_v17 = vmul.f32 %v514_v1, %v503_v12  ;;  %v671_v1 = vld [vmem:[%s2597_s2 + $0x10] sm:$0xff] }
  0x9a   : > { %v489_v20 = vrot.slane %v482_v14, %v2032_v27  ;;  %v521_v21 = vcombine.low %v517_v15, %v518_v17  ;;  %v543_v22 = vpop.permute.xlu1 %542  ;;  %v541_v23 = vpop.permute.xlu0 %540 }
  0x9b   : > { %v545_v24 = vsel %vm544_vm6, %v541_v23, %v543_v22  ;;  %v546_v25 = vsel %vm544_vm6, %v543_v22, %v541_v23 }
  0x9c   : > { %492 = vst.msk [vmem:[#allocation2 + $0x3] ss:$8 sm:$0x3] %vm1981_vm0, %v489_v20  ;;  %v528_v28 = vrot.slane %v521_v21, %v2032_v27  ;;  %v560_v29 = vmul.f32 %v553_v13, %v545_v24  ;;  %v561_v30 = vmul.f32 %v557_v18, %v546_v25 }
  0x9e   : > { %v535_v33 = vrot.slane %v528_v28, %v2032_v27  ;;  %v564_v34 = vcombine.low %v560_v29, %v561_v30  ;;  %v586_v35 = vpop.permute.xlu1 %585  ;;  %v584_v36 = vpop.permute.xlu0 %583  ;;  %v1143_v29 = vld [vmem:[%s2599_s4 + $0x8] sm:$0xff]  ;;  %v1202_v30 = vld [vmem:[%s2600_s5] sm:$0xff] }
  0x9f   : > { %v588_v37 = vsel %vm587_vm7, %v584_v36, %v586_v35  ;;  %v589_v38 = vsel %vm587_vm7, %v586_v35, %v584_v36  ;;  %1797 = vmatprep.mubr.msk.f32.mxu1 %vm1220_vm13, %v1143_v29 }
  0xa0   : > { %538 = vst.msk [vmem:[#allocation2 + $0x5] ss:$8 sm:$0x3] %vm1981_vm0, %v535_v33  ;;  %v571_v40 = vrot.slane %v564_v34, %v2032_v27  ;;  %v603_v41 = vmul.f32 %v596_v26, %v588_v37  ;;  %v604_v42 = vmul.f32 %v600_v31, %v589_v38  ;;  %v1203_v31 = vld [vmem:[%s2600_s5 + $0x8] sm:$0xff]  ;;  %v1693_v33 = vld [vmem:[#allocation4] sm:$0x1] }
  0xa2   : > { %v578_v44 = vrot.slane %v571_v40, %v2032_v27  ;;  %v607_v45 = vcombine.low %v603_v41, %v604_v42  ;;  %v629_v46 = vpop.permute.xlu1 %628  ;;  %v627_v47 = vpop.permute.xlu0 %626  ;;  %v818_v42 = vld [vmem:[%s2596_s1] ss:$8 sm:$0x3] }
  0xa3   : > { %v631_v48 = vsel %vm630_vm8, %v627_v47, %v629_v46  ;;  %v632_v49 = vsel %vm630_vm8, %v629_v46, %v627_v47  ;;  %v827_v46 = vrot.slane %v818_v42, %v1979_v4 }
  0xa4   : > { %581 = vst.msk [vmem:[#allocation2 + $0x6] ss:$8 sm:$0x3] %vm1981_vm0, %v578_v44  ;;  %v614_v50 = vrot.slane %v607_v45, %v2032_v27  ;;  %v646_v51 = vmul.f32 %v639_v39, %v631_v48  ;;  %v647_v52 = vmul.f32 %v643_v43, %v632_v49  ;;  %v823_v45 = vrot.slane %v818_v42, %v1973_v3 }
  0xa6   : > { %v621_v53 = vrot.slane %v614_v50, %v2032_v27  ;;  %v650_v54 = vcombine.low %v646_v51, %v647_v52 }
  0xa8   : > { %624 = vst.msk [vmem:[#allocation2 + $0x7] ss:$8 sm:$0x3] %vm1981_vm0, %v621_v53  ;;  %v657_v55 = vrot.slane %v650_v54, %v2032_v27 }
  0xaa   : > { %v664_v56 = vrot.slane %v657_v55, %v2032_v27 }
  0xac   : > { %667 = vst.msk [vmem:[#allocation2 + $0x10] ss:$8 sm:$0x3] %vm1981_vm0, %v664_v56 }
  0xaf   : > { %v673_v57 = vld [vmem:[#allocation2 + $0x8] sm:$0xff]  ;;  %v672_v59 = vld [vmem:[#allocation2] sm:$0xff] }
  0xb3   : > { %v675_v58 = vld [vmem:[#allocation2 + $0x18] sm:$0x1]  ;;  %v674_v60 = vld [vmem:[#allocation2 + $0x10] sm:$0x1]  ;;  %v682_v2 = vpop.permute.xlu0 %681  ;;  %v687_v17 = vpop.permute.xlu1 %686 }
  0xb4   : > { %v1811_v61 = vpack.c.bf16 %v675_v58, %v673_v57  ;;  %v1814_v62 = vpack.c.bf16 %v674_v60, %v672_v59 }
  0xb6   : > { %1813 = vmatprep.subr.msk.bf16.mxu0 %vm1812_vm11, %v1811_v61 }
  0xb7   : > { %1816 = vmatpush1.bf16.msk.msra.mxu0 %vm1812_vm11, %v1814_v62  ;;  %v692_v23 = vpop.permute.xlu1 %691 }
  0xba   : > { %1787 = vmatmul.mubr.msk.f32.vlgmr.msra.gmra.mrb[0].mxu0 %vm694_vm12, %v669_v63 }
  0xbb   : > { %781 = vmatprep.mubr.f32.mxu0 %v1911_v9 }
  0xbe   : > { %1788 = vmatmul.mubr.msk.f32.gmra.mrb[2].mxu0 %vm694_vm12, %v670_v0 }
  0xbf   : > { %787 = vmatprep.mubr.f32.mxu0 %v1911_v9 }
  0xc2   : > { %1789 = vmatmul.mubr.msk.f32.gmra.mrb[4].mxu0 %vm694_vm12, %v671_v1 }
  0xc3   : > { %1392 = vmatprep.mubr.f32.mxu0 %v1911_v9 }
 0x18d   : > { %v777_v5 = vpop.f32.mrb[0].mxu0 }
 0x18e   : > { %v778_v7 = vadd.f32 %v777_v5, %v682_v2  ;;  %v779_v8 = vpop.f32.mrb[1].mxu0  ;;  %v1790_v5 = vld [vmem:[%s2596_s1 + $0x1] ss:$8 sm:$0x3] }
 0x18f   : > { %v780_v10 = vadd.f32 %v779_v8, %v682_v2 }
 0x190   : > { %v2143_v11 = vmax.f32 %v778_v7, 0.0 }
 0x191   : > { %v2145_v12 = vmax.f32 %v780_v10, 0.0  ;;  %v783_v13 = vpop.f32.mrb[2].mxu0  ;;  %v865_v10 = vrot.slane %v1790_v5, %v1973_v3 }
 0x192   : > { %v785_v14 = vpop.f32.mrb[3].mxu0  ;;  %800 = vrot.lane.b32.xlu0 %v2143_v11, %s1904_s13  ;;  %v784_v19 = vadd.f32 %v783_v13, %v687_v17  ;;  %v1791_v13 = vld [vmem:[%s2596_s1 + $0x2] ss:$8 sm:$0x3] }
 0x193   : > { %848 = vrot.lane.b32.xlu1 %v2145_v12, %s1903_s12  ;;  %v786_v21 = vadd.f32 %v785_v14, %v687_v17  ;;  %v869_v14 = vrot.slane %v1790_v5, %v1979_v4 }
 0x194   : > { %v2159_v20 = vmax.f32 %v784_v19, 0.0  ;;  %v911_v19 = vrot.slane %v1791_v13, %v1979_v4 }
 0x195   : > { %v789_v15 = vpop.f32.mrb[4].mxu0  ;;  %v2169_v22 = vmax.f32 %v786_v21, 0.0 }
 0x196   : > { %842 = vrot.lane.b32.xlu0 %v2143_v11, %s1903_s12  ;;  %v791_v18 = vpop.f32.mrb[5].mxu0  ;;  %v790_v24 = vadd.f32 %v789_v15, %v692_v23 }
 0x197   : > { %932 = vrot.lane.b32.xlu1 %v2145_v12, %s1906_s15  ;;  %v792_v26 = vadd.f32 %v791_v18, %v692_v23 }
 0x198   : > { %v2179_v25 = vmax.f32 %v790_v24, 0.0 }
 0x199   : > { %v2197_v28 = vmax.f32 %v792_v26, 0.0 }
 0x19a   : > { %884 = vrot.lane.b32.xlu0 %v2143_v11, %s1905_s14 }
 0x19b   : > { %980 = vrot.lane.b32.xlu1 %v2145_v12, %s1907_s16 }
 0x19e   : > { %926 = vrot.lane.b32.xlu0 %v2143_v11, %s1906_s15 }
 0x19f   : > { %802 = vrot.lane.b32.xlu1 %v2159_v20, %s1904_s13 }
 0x1a2   : > { %974 = vrot.lane.b32.xlu0 %v2143_v11, %s1907_s16 }
 0x1a3   : > { %886 = vrot.lane.b32.xlu1 %v2159_v20, %s1905_s14 }
 0x1a6   : > { %806 = vrot.lane.b32.xlu0 %v2145_v12, %s1904_s13 }
 0x1a7   : > { %808 = vrot.lane.b32.xlu1 %v2169_v22, %s1904_s13 }
 0x1aa   : > { %890 = vrot.lane.b32.xlu0 %v2145_v12, %s1905_s14 }
 0x1ab   : > { %892 = vrot.lane.b32.xlu1 %v2169_v22, %s1905_s14 }
 0x1ae   : > { %844 = vrot.lane.b32.xlu0 %v2159_v20, %s1903_s12 }
 0x1af   : > { %846 = vrot.lane.b32.xlu1 %v2179_v25, %s1903_s12 }
 0x1b2   : > { %928 = vrot.lane.b32.xlu0 %v2159_v20, %s1906_s15 }
 0x1b3   : > { %1018 = vrot.lane.b32.xlu1 %v2159_v20, %s1908_s17 }
 0x1b6   : > { %850 = vrot.lane.b32.xlu0 %v2169_v22, %s1903_s12 }
 0x1b7   : > { %930 = vrot.lane.b32.xlu1 %v2179_v25, %s1906_s15 }
 0x1ba   : > { %934 = vrot.lane.b32.xlu0 %v2169_v22, %s1906_s15 }
 0x1bb   : > { %978 = vrot.lane.b32.xlu1 %v2179_v25, %s1907_s16 }
 0x1be   : > { %804 = vrot.lane.b32.xlu0 %v2179_v25, %s1904_s13 }
 0x1bf   : > { %810 = vrot.lane.b32.xlu1 %v2197_v28, %s1904_s13 }
 0x1c2   : > { %976 = vrot.lane.b32.xlu0 %v2159_v20, %s1907_s16 }
 0x1c3   : > { %852 = vrot.lane.b32.xlu1 %v2197_v28, %s1903_s12 }
 0x1c6   : > { %982 = vrot.lane.b32.xlu0 %v2169_v22, %s1907_s16 }
 0x1c7   : > { %1024 = vrot.lane.b32.xlu1 %v2169_v22, %s1908_s17 }
 0x1ca   : > { %888 = vrot.lane.b32.xlu0 %v2179_v25, %s1905_s14 }
 0x1cb   : > { %894 = vrot.lane.b32.xlu1 %v2197_v28, %s1905_s14 }
 0x1ce   : > { %1016 = vrot.lane.b32.xlu0 %v2143_v11, %s1908_s17 }
 0x1cf   : > { %936 = vrot.lane.b32.xlu1 %v2197_v28, %s1906_s15 }
 0x1d2   : > { %1022 = vrot.lane.b32.xlu0 %v2145_v12, %s1908_s17 }
 0x1d3   : > { %1064 = vrot.lane.b32.xlu1 %v2145_v12, %s1909_s18 }
 0x1d6   : > { %1020 = vrot.lane.b32.xlu0 %v2179_v25, %s1908_s17 }
 0x1d7   : > { %1062 = vrot.lane.b32.xlu1 %v2179_v25, %s1909_s18 }
 0x1da   : > { %1058 = vrot.lane.b32.xlu0 %v2143_v11, %s1909_s18 }
 0x1db   : > { %984 = vrot.lane.b32.xlu1 %v2197_v28, %s1907_s16 }
 0x1de   : > { %1060 = vrot.lane.b32.xlu0 %v2159_v20, %s1909_s18 }
 0x1df   : > { %1102 = vrot.lane.b32.xlu1 %v2159_v20, %s1910_s19 }
 0x1e2   : > { %1066 = vrot.lane.b32.xlu0 %v2169_v22, %s1909_s18 }
 0x1e3   : > { %1026 = vrot.lane.b32.xlu1 %v2197_v28, %s1908_s17 }
 0x1e6   : > { %1100 = vrot.lane.b32.xlu0 %v2143_v11, %s1910_s19 }
 0x1e7   : > { %1068 = vrot.lane.b32.xlu1 %v2197_v28, %s1909_s18 }
 0x1ea   : > { %1106 = vrot.lane.b32.xlu0 %v2145_v12, %s1910_s19 }
 0x1eb   : > { %1108 = vrot.lane.b32.xlu1 %v2169_v22, %s1910_s19 }
 0x1ee   : > { %1104 = vrot.lane.b32.xlu0 %v2179_v25, %s1910_s19 }
 0x1ef   : > { %1110 = vrot.lane.b32.xlu1 %v2197_v28, %s1910_s19 }
 0x1f2   : > { %1207 = vperm.xlu0 %1893, %v1202_v30  }
 0x1f3   : > { %1212 = vperm.xlu1 %1894, %v1203_v31  }
 0x1f6   : > { %1217 = vperm.xlu0 %1893, %v1204_v32  }
 0x1f7   : > { %1696 = vperm.xlu1 %1894, %v1693_v33  }
 0x204   : > { %v801_v34 = vpop.permute.xlu0 %800 }
 0x205   : > { %v849_v35 = vpop.permute.xlu1 %848 }
 0x208   : > { %v843_v36 = vpop.permute.xlu0 %842 }
 0x209   : > { %v2264_v37 = vpop.permute.xlu1 %932  ;;  %v857_v15 = vsel %vm369_vm1, %v849_v35, %v843_v36  ;;  %v854_v17 = vsel %vm369_vm1, %v843_v36, %v849_v35 }
 0x20a   : > { %v872_v23 = vmul.f32 %v865_v10, %v857_v15  ;;  %v873_v30 = vmul.f32 %v869_v14, %v854_v17 }
 0x20c   : > { %v885_v38 = vpop.permute.xlu0 %884 }
 0x20d   : > { %v2266_v39 = vpop.permute.xlu1 %980 }
 0x210   : > { %v2268_v40 = vpop.permute.xlu0 %926 }
 0x211   : > { %v803_v41 = vpop.permute.xlu1 %802 }
 0x214   : > { %v2273_v43 = vpop.permute.xlu0 %974 }
 0x215   : > { %v887_v44 = vpop.permute.xlu1 %886 }
 0x218   : > { %v807_v47 = vpop.permute.xlu0 %806 }
 0x219   : > { %v812_v48 = vsel %vm324_vm2, %v801_v34, %v807_v47  ;;  %v815_v49 = vsel %vm324_vm2, %v807_v47, %v801_v34  ;;  %v809_v50 = vpop.permute.xlu1 %808  ;;  %v907_v34 = vrot.slane %v1791_v13, %v1973_v3  ;;  %v941_v13 = vsel %vm455_vm4, %v2264_v37, %v2268_v40 }
 0x21a   : > { %v830_v51 = vmul.f32 %v823_v45, %v815_v49  ;;  %v813_v52 = vsel %vm324_vm2, %v803_v41, %v809_v50  ;;  %v816_v53 = vsel %vm324_vm2, %v809_v50, %v803_v41  ;;  %v831_v54 = vmul.f32 %v827_v46, %v812_v48 }
 0x21b   : > { %v832_v55 = vmul.f32 %v823_v45, %v816_v53  ;;  %v833_v56 = vmul.f32 %v827_v46, %v813_v52 }
 0x21c   : > { %v891_v57 = vpop.permute.xlu0 %890 }
 0x21d   : > { %v893_v58 = vpop.permute.xlu1 %892  ;;  %v1817_v59 = vpack.c.bf16 %v833_v56, %v831_v54  ;;  %v1819_v60 = vpack.c.bf16 %v832_v55, %v830_v51  ;;  %v896_v24 = vsel %vm412_vm3, %v885_v38, %v891_v57  ;;  %v899_v42 = vsel %vm412_vm3, %v891_v57, %v885_v38  ;;  %v1792_v38 = vld [vmem:[%s2596_s1 + $0x3] ss:$8 sm:$0x3] }
 0x21e   : > { %v897_v31 = vsel %vm412_vm3, %v887_v44, %v893_v58  ;;  %v915_v47 = vmul.f32 %v911_v19, %v896_v24 }
 0x21f   : > { %1818 = vmatprep.subr.bf16.mxu1 %v1817_v59 }
 0x220   : > { %1820 = vmatpush1.bf16.msra.mxu1 %v1819_v60  ;;  %v845_v61 = vpop.permute.xlu0 %844  ;;  %v914_v60 = vmul.f32 %v907_v34, %v899_v42 }
 0x221   : > { %v847_v62 = vpop.permute.xlu1 %846 }
 0x224   : > { %v2285_v63 = vpop.permute.xlu0 %928 }
 0x225   : > { %v2287_v0 = vpop.permute.xlu1 %1018 }
 0x228   : > { %v851_v1 = vpop.permute.xlu0 %850 }
 0x229   : > { %v2289_v2 = vpop.permute.xlu1 %930  ;;  %v855_v35 = vsel %vm369_vm1, %v845_v61, %v851_v1  ;;  %v858_v36 = vsel %vm369_vm1, %v851_v1, %v845_v61  ;;  %v949_v1 = vrot.slane %v1792_v38, %v1973_v3 }
 0x22a   : > { %v874_v53 = vmul.f32 %v865_v10, %v858_v36  ;;  %v875_v54 = vmul.f32 %v869_v14, %v855_v35 }
 0x22c   : > { %v2294_v7 = vpop.permute.xlu0 %934 }
 0x22d   : > { %v2296_v8 = vpop.permute.xlu1 %978 }
 0x230   : > { %v805_v18 = vpop.permute.xlu0 %804 }
 0x231   : > { %v811_v21 = vpop.permute.xlu1 %810 }
 0x232   : > { %v814_v26 = vsel %vm324_vm2, %v805_v18, %v811_v21  ;;  %v817_v29 = vsel %vm324_vm2, %v811_v21, %v805_v18 }
 0x233   : > { %v834_v32 = vmul.f32 %v823_v45, %v817_v29  ;;  %v835_v33 = vmul.f32 %v827_v46, %v814_v26  ;;  %v900_v45 = vsel %vm412_vm3, %v893_v58, %v887_v44  ;;  %v917_v46 = vmul.f32 %v911_v19, %v897_v31  ;;  %v1793_v26 = vld [vmem:[%s2596_s1 + $0x5] ss:$8 sm:$0x3] }
 0x234   : > { %v2321_v41 = vpop.permute.xlu0 %976  ;;  %v916_v61 = vmul.f32 %v907_v34, %v900_v45  ;;  %v1001_v36 = vrot.slane %v1793_v26, %v1979_v4 }
 0x235   : > { %v853_v48 = vpop.permute.xlu1 %852  ;;  %v1821_v49 = vpack.c.bf16 %v873_v30, %v835_v33  ;;  %v1823_v50 = vpack.c.bf16 %v872_v23, %v834_v32  ;;  %v1829_v5 = vpack.c.bf16 %v917_v46, %v915_v47  ;;  %v956_v23 = vmul.f32 %v949_v1, %v941_v13 }
 0x236   : > { %v856_v51 = vsel %vm369_vm1, %v847_v62, %v853_v48  ;;  %v859_v52 = vsel %vm369_vm1, %v853_v48, %v847_v62  ;;  %v953_v62 = vrot.slane %v1792_v38, %v1979_v4  ;;  %v1831_v21 = vpack.c.bf16 %v916_v61, %v914_v60 }
 0x237   : > { %v876_v55 = vmul.f32 %v865_v10, %v859_v52  ;;  %v877_v56 = vmul.f32 %v869_v14, %v856_v51  ;;  %1822 = vmatprep.subr.bf16.mxu1 %v1821_v49  ;;  %v938_v10 = vsel %vm455_vm4, %v2268_v40, %v2264_v37  ;;  %v939_v37 = vsel %vm455_vm4, %v2285_v63, %v2294_v7 }
 0x238   : > { %1824 = vmatpush1.bf16.msra.mxu1 %v1823_v50  ;;  %v983_v57 = vpop.permute.xlu0 %982  ;;  %v957_v24 = vmul.f32 %v953_v62, %v938_v10  ;;  %v942_v40 = vsel %vm455_vm4, %v2294_v7, %v2285_v63  ;;  %v959_v47 = vmul.f32 %v953_v62, %v939_v37  ;;  %v989_v63 = vsel %vm501_vm5, %v2266_v39, %v2273_v43 }
 0x239   : > { %v2334_v59 = vpop.permute.xlu1 %1024  ;;  %v1825_v44 = vpack.c.bf16 %v877_v56, %v875_v54  ;;  %v1827_v58 = vpack.c.bf16 %v876_v55, %v874_v53  ;;  %v958_v42 = vmul.f32 %v949_v1, %v942_v40  ;;  %v997_v50 = vrot.slane %v1793_v26, %v1973_v3 }
 0x23a   : > { %v1005_v52 = vmul.f32 %v1001_v36, %v989_v63  ;;  %v1841_v53 = vpack.c.bf16 %v2169_v22, %v2145_v12  ;;  %v987_v38 = vsel %vm501_vm5, %v2321_v41, %v983_v57  ;;  %v990_v12 = vsel %vm501_vm5, %v983_v57, %v2321_v41 }
 0x23b   : > { %1826 = vmatprep.subr.bf16.mxu1 %v1825_v44  ;;  %v1794_v44 = vld [vmem:[%s2596_s1 + $0x6] ss:$8 sm:$0x3]  ;;  %v1006_v60 = vmul.f32 %v997_v50, %v987_v38 }
 0x23c   : > { %1828 = vmatpush1.bf16.msra.mxu1 %v1827_v58  ;;  %v889_v14 = vpop.permute.xlu0 %888  ;;  %v1845_v22 = vpack.c.bf16 %v1005_v52, %v2197_v28  ;;  %v1043_v61 = vrot.slane %v1794_v44, %v1979_v4  ;;  %v1039_v13 = vrot.slane %v1794_v44, %v1973_v3 }
 0x23d   : > { %v895_v15 = vpop.permute.xlu1 %894  ;;  %1830 = vmatprep.subr.bf16.mxu1 %v1829_v5  ;;  %v1007_v5 = vmul.f32 %v1001_v36, %v990_v12 }
 0x23e   : > { %v898_v17 = vsel %vm412_vm3, %v889_v14, %v895_v15  ;;  %v901_v18 = vsel %vm412_vm3, %v895_v15, %v889_v14  ;;  %v1795_v14 = vld [vmem:[%s2596_s1 + $0x7] ss:$8 sm:$0x3] }
 0x23f   : > { %v918_v29 = vmul.f32 %v907_v34, %v901_v18  ;;  %v919_v30 = vmul.f32 %v911_v19, %v898_v17  ;;  %v1029_v17 = vsel %vm544_vm6, %v2287_v0, %v2334_v59  ;;  %v1081_v26 = vrot.slane %v1795_v14, %v1973_v3 }
 0x240   : > { %1832 = vmatpush1.bf16.msra.mxu1 %v1831_v21  ;;  %v1017_v31 = vpop.permute.xlu0 %1016  ;;  %v1048_v37 = vmul.f32 %v1039_v13, %v1029_v17  ;;  %v1144_v17 = vld [vmem:[%s2599_s4 + $0x10] sm:$0xff] }
 0x241   : > { %v937_v32 = vpop.permute.xlu1 %936  ;;  %v1833_v33 = vpack.c.bf16 %v957_v24, %v919_v30  ;;  %v1835_v35 = vpack.c.bf16 %v956_v23, %v918_v29  ;;  %v1085_v29 = vrot.slane %v1795_v14, %v1979_v4  ;;  %v1142_v14 = vld [vmem:[%s2599_s4] sm:$0xff] }
 0x242   : > { %v940_v19 = vsel %vm455_vm4, %v2289_v2, %v937_v32  ;;  %v943_v34 = vsel %vm455_vm4, %v937_v32, %v2289_v2  ;;  %v986_v2 = vsel %vm501_vm5, %v2273_v43, %v2266_v39  ;;  %v1843_v39 = vpack.c.bf16 %v2159_v20, %v2143_v11 }
 0x243   : > { %v960_v48 = vmul.f32 %v949_v1, %v943_v34  ;;  %v961_v49 = vmul.f32 %v953_v62, %v940_v19  ;;  %1834 = vmatprep.subr.bf16.mxu1 %v1833_v33  ;;  %v1004_v55 = vmul.f32 %v997_v50, %v986_v2  ;;  %v1032_v11 = vsel %vm544_vm6, %v2334_v59, %v2287_v0 }
 0x244   : > { %1836 = vmatpush1.bf16.msra.mxu1 %v1835_v35  ;;  %v1023_v7 = vpop.permute.xlu0 %1022 }
 0x245   : > { %v1065_v45 = vpop.permute.xlu1 %1064  ;;  %v1837_v46 = vpack.c.bf16 %v961_v49, %v959_v47  ;;  %v1839_v51 = vpack.c.bf16 %v960_v48, %v958_v42  ;;  %v1031_v43 = vsel %vm544_vm6, %v1023_v7, %v1017_v31  ;;  %v1847_v62 = vpack.c.bf16 %v1004_v55, %v2179_v25  ;;  %v1796_v47 = vld [vmem:[%s2596_s1 + $0x10] ss:$8 sm:$0x3] }
 0x246   : > { %v1028_v41 = vsel %vm544_vm6, %v1017_v31, %v1023_v7  ;;  %v1047_v57 = vmul.f32 %v1043_v61, %v1031_v43  ;;  %v1123_v2 = vrot.slane %v1796_v47, %v1973_v3  ;;  %v1127_v52 = vrot.slane %v1796_v47, %v1979_v4 }
 0x247   : > { %1838 = vmatprep.subr.bf16.mxu1 %v1837_v46  ;;  %v1046_v24 = vmul.f32 %v1039_v13, %v1028_v41 }
 0x248   : > { %1840 = vmatpush1.bf16.msra.mxu1 %v1839_v51  ;;  %v1021_v54 = vpop.permute.xlu0 %1020 }
 0x249   : > { %v1063_v56 = vpop.permute.xlu1 %1062  ;;  %1842 = vmatprep.subr.bf16.mxu1 %v1841_v53  ;;  %v1855_v35 = vpack.c.bf16 %v1048_v37, %v1046_v24 }
 0x24c   : > { %v1059_v58 = vpop.permute.xlu0 %1058  ;;  %1844 = vmatpush1.bf16.msra.mxu1 %v1843_v39 }
 0x24d   : > { %v985_v1 = vpop.permute.xlu1 %984  ;;  %1846 = vmatprep.subr.bf16.mxu1 %v1845_v22  ;;  %v1070_v40 = vsel %vm587_vm7, %v1059_v58, %v1065_v45  ;;  %v1073_v31 = vsel %vm587_vm7, %v1065_v45, %v1059_v58 }
 0x24e   : > { %v988_v20 = vsel %vm501_vm5, %v2296_v8, %v985_v1  ;;  %v991_v28 = vsel %vm501_vm5, %v985_v1, %v2296_v8  ;;  %v1049_v8 = vmul.f32 %v1043_v61, %v1032_v11  ;;  %v1089_v19 = vmul.f32 %v1085_v29, %v1073_v31 }
 0x24f   : > { %v1008_v10 = vmul.f32 %v997_v50, %v988_v20  ;;  %v1009_v25 = vmul.f32 %v1001_v36, %v991_v28  ;;  %v1088_v36 = vmul.f32 %v1081_v26, %v1070_v40 }
 0x250   : > { %v1061_v15 = vpop.permute.xlu0 %1060  ;;  %1848 = vmatpush1.bf16.msra.mxu1 %v1847_v62  ;;  %v1853_v30 = vpack.c.bf16 %v1049_v8, %v1047_v57  ;;  %v1147_v8 = vld [vmem:[%s2599_s4 + $0x28] sm:$0xff] }
 0x251   : > { %v1103_v18 = vpop.permute.xlu1 %1102  ;;  %v1849_v21 = vpack.c.bf16 %v1009_v25, %v1007_v5  ;;  %v1851_v23 = vpack.c.bf16 %v1008_v10, %v1006_v60 }
 0x253   : > { %1850 = vmatprep.subr.bf16.mxu1 %v1849_v21 }
 0x254   : > { %v1067_v32 = vpop.permute.xlu0 %1066  ;;  %1852 = vmatpush1.bf16.msra.mxu1 %v1851_v23 }
 0x255   : > { %v1027_v0 = vpop.permute.xlu1 %1026  ;;  %1854 = vmatprep.subr.bf16.mxu1 %v1853_v30  ;;  %v1071_v48 = vsel %vm587_vm7, %v1061_v15, %v1067_v32  ;;  %v1074_v49 = vsel %vm587_vm7, %v1067_v32, %v1061_v15  ;;  %v1145_v15 = vld [vmem:[%s2599_s4 + $0x18] sm:$0xff] }
 0x256   : > { %v1030_v59 = vsel %vm544_vm6, %v1021_v54, %v1027_v0  ;;  %v1033_v33 = vsel %vm544_vm6, %v1027_v0, %v1021_v54  ;;  %v1090_v53 = vmul.f32 %v1081_v26, %v1071_v48  ;;  %v1091_v54 = vmul.f32 %v1085_v29, %v1074_v49 }
 0x257   : > { %v1050_v34 = vmul.f32 %v1039_v13, %v1030_v59  ;;  %v1051_v42 = vmul.f32 %v1043_v61, %v1033_v33 }
 0x258   : > { %v1101_v63 = vpop.permute.xlu0 %1100  ;;  %1856 = vmatpush1.bf16.msra.mxu1 %v1855_v35 }
 0x259   : > { %v1069_v7 = vpop.permute.xlu1 %1068  ;;  %v1857_v50 = vpack.c.bf16 %v1089_v19, %v1051_v42  ;;  %v1859_v45 = vpack.c.bf16 %v1088_v36, %v1050_v34 }
 0x25a   : > { %v1072_v46 = vsel %vm587_vm7, %v1063_v56, %v1069_v7  ;;  %v1075_v51 = vsel %vm587_vm7, %v1069_v7, %v1063_v56 }
 0x25b   : > { %v1092_v55 = vmul.f32 %v1081_v26, %v1072_v46  ;;  %v1093_v38 = vmul.f32 %v1085_v29, %v1075_v51  ;;  %1858 = vmatprep.subr.bf16.mxu1 %v1857_v50  ;;  %v1319_v50 = vld [vmem:[%s2601_s6] sm:$0xff] }
 0x25c   : > { %v1107_v44 = vpop.permute.xlu0 %1106  ;;  %1860 = vmatpush1.bf16.msra.mxu1 %v1859_v45  ;;  %v1320_v45 = vld [vmem:[%s2601_s6 + $0x8] sm:$0x1] }
 0x25d   : > { %v1112_v39 = vsel %vm630_vm8, %v1101_v63, %v1107_v44  ;;  %v1115_v12 = vsel %vm630_vm8, %v1107_v44, %v1101_v63  ;;  %v1109_v22 = vpop.permute.xlu1 %1108  ;;  %v1861_v43 = vpack.c.bf16 %v1093_v38, %v1091_v54  ;;  %v1863_v56 = vpack.c.bf16 %v1092_v55, %v1090_v53 }
 0x25e   : > { %v1130_v58 = vmul.f32 %v1123_v2, %v1112_v39  ;;  %v1131_v60 = vmul.f32 %v1127_v52, %v1115_v12  ;;  %v1113_v61 = vsel %vm630_vm8, %v1103_v18, %v1109_v22  ;;  %v1116_v1 = vsel %vm630_vm8, %v1109_v22, %v1103_v18  ;;  %v1146_v18 = vld [vmem:[%s2599_s4 + $0x20] sm:$0xff] }
 0x25f   : > { %v1132_v62 = vmul.f32 %v1123_v2, %v1113_v61  ;;  %v1133_v5 = vmul.f32 %v1127_v52, %v1116_v1  ;;  %1862 = vmatprep.subr.bf16.mxu1 %v1861_v43 }
 0x260   : > { %v1105_v11 = vpop.permute.xlu0 %1104  ;;  %1864 = vmatpush1.bf16.msra.mxu1 %v1863_v56 }
 0x261   : > { %v1111_v20 = vpop.permute.xlu1 %1110  ;;  %v1865_v28 = vpack.c.bf16 %v1133_v5, %v1131_v60  ;;  %v1867_v41 = vpack.c.bf16 %v1132_v62, %v1130_v58 }
 0x262   : > { %v1117_v57 = vsel %vm630_vm8, %v1111_v20, %v1105_v11  ;;  %v1114_v10 = vsel %vm630_vm8, %v1105_v11, %v1111_v20 }
 0x263   : > { %v1135_v25 = vmul.f32 %v1127_v52, %v1117_v57  ;;  %1866 = vmatprep.subr.bf16.mxu1 %v1865_v28  ;;  %v1134_v13 = vmul.f32 %v1123_v2, %v1114_v10 }
 0x264   : > { %1868 = vmatpush1.bf16.msra.mxu1 %v1867_v41 }
 0x265   : > { %1282 = vmatprep.subr.mxu1 %v1135_v25 }
 0x268   : > { %1283 = vmatpush1.msra.mxu1 %v1134_v13 }
 0x269   : > { %1295 = vmatmul.mubr.f32.vlgmr.msra.gmra.mrb[0].mxu1 %v1142_v14 }
 0x26a   : > { %1798 = vmatprep.mubr.msk.f32.mxu1 %vm1220_vm13, %v1145_v15 }
 0x26d   : > { %1301 = vmatmul.mubr.f32.gmra.mrb[2].mxu1 %v1144_v17  ;;  %v1802_v17 = vld [vmem:[%s2596_s1 + $0x1] ss:$8 sm:$0x3] }
 0x26e   : > { %1799 = vmatprep.mubr.msk.f32.mxu1 %vm1220_vm13, %v1147_v8 }
 0x271   : > { %1307 = vmatmul.mubr.f32.gmra.mrb[4].mxu1 %v1146_v18  ;;  %v1208_v24 = vpop.permute.xlu0 %1207 }
 0x272   : > { %v1213_v29 = vpop.permute.xlu1 %1212 }
 0x275   : > { %v1218_v19 = vpop.permute.xlu0 %1217 }
 0x276   : > { %v2506_v13 = vpop.permute.xlu1 %1696 }
 0x33c   : > { %v1296_v21 = vpop.f32.mrb[0].mxu1 }
 0x33d   : > { %v1298_v23 = vpop.f32.mrb[1].mxu1  ;;  %v1297_v26 = vadd.f32 %v1296_v21, %v1208_v24  ;;  %v1427_v21 = vld [vmem:[%s2596_s1] ss:$8 sm:$0x3] }
 0x33e   : > { %v1299_v30 = vadd.f32 %v1298_v23, %v1208_v24  ;;  %v1803_v23 = vld [vmem:[%s2596_s1 + $0x2] ss:$8 sm:$0x3]  ;;  %v1464_v24 = vrot.slane %v1802_v17, %v1973_v3 }
 0x33f   : > { %v1313_v0 = vmax.f32 %v1297_v26, 0.0  ;;  %v1468_v26 = vrot.slane %v1802_v17, %v1979_v4 }
 0x340   : > { %v1302_v37 = vpop.f32.mrb[2].mxu1  ;;  %v1314_v33 = vmax.f32 %v1299_v30, 0.0 }
 0x341   : > { %v1303_v40 = vadd.f32 %v1302_v37, %v1213_v29  ;;  %v1304_v31 = vpop.f32.mrb[3].mxu1  ;;  %v1804_v37 = vld [vmem:[%s2596_s1 + $0x3] ss:$8 sm:$0x3] }
 0x342   : > { %v1305_v32 = vadd.f32 %v1304_v31, %v1213_v29  ;;  %v1436_v31 = vrot.slane %v1427_v21, %v1979_v4 }
 0x343   : > { %v1315_v59 = vmax.f32 %v1303_v40, 0.0  ;;  %v1432_v40 = vrot.slane %v1427_v21, %v1973_v3 }
 0x344   : > { %v1316_v35 = vmax.f32 %v1305_v32, 0.0  ;;  %v1308_v36 = vpop.f32.mrb[4].mxu1 }
 0x345   : > { %v1871_v34 = vpack.c.bf16 %v1315_v59, %v1313_v0  ;;  %v1310_v42 = vpop.f32.mrb[5].mxu1  ;;  %v1309_v49 = vadd.f32 %v1308_v36, %v1218_v19  ;;  %v1498_v0 = vrot.slane %v1803_v23, %v1973_v3  ;;  %v1502_v59 = vrot.slane %v1803_v23, %v1979_v4 }
 0x346   : > { %v1869_v47 = vpack.c.bf16 %v1316_v35, %v1314_v33  ;;  %v1311_v48 = vadd.f32 %v1310_v42, %v1218_v19 }
 0x347   : > { %v1317_v7 = vmax.f32 %v1309_v49, 0.0  ;;  %v1536_v49 = vrot.slane %v1804_v37, %v1979_v4 }
 0x348   : > { %v1318_v63 = vmax.f32 %v1311_v48, 0.0  ;;  %1870 = vmatprep.subr.bf16.mxu0 %v1869_v47  ;;  %v1532_v48 = vrot.slane %v1804_v37, %v1973_v3 }
 0x349   : > { %1872 = vmatpush1.bf16.msra.mxu0 %v1871_v34 }
 0x34a   : > { %1332 = vmatprep.subr.mxu0 %v1318_v63 }
 0x34d   : > { %1333 = vmatpush1.msra.mxu0 %v1317_v7 }
 0x34e   : > { %1800 = vmatmul.mubr.msk.f32.vlgmr.msra.gmra.mrb[6].mxu0 %vm1321_vm14, %v1319_v50 }
 0x34f   : > { %1398 = vmatprep.mubr.f32.mxu0 %v1911_v9 }
 0x352   : > { %1801 = vmatmul.mubr.msk.f32.gmra.mrb[8].mxu0 %vm1321_vm14, %v1320_v45 }
 0x421   : > { %v1394_v46 = vpop.f32.mrb[6].mxu0 }
 0x422   : > { %1405 = vst [vmem:[#allocation2] sm:$0xff] %v1394_v46  ;;  %v1396_v51 = vpop.f32.mrb[7].mxu0 }
 0x423   : > { %1406 = vst [vmem:[#allocation2 + $0x8] sm:$0xff] %v1396_v51 }
 0x425   : > { %v1400_v2 = vpop.f32.mrb[8].mxu0 }
 0x426   : > { %1407 = vst [vmem:[#allocation2 + $0x10] sm:$0x1] %v1400_v2  ;;  %v1402_v52 = vpop.f32.mrb[9].mxu0 }
 0x427   : > { %1408 = vst [vmem:[#allocation2 + $0x18] sm:$0x1] %v1402_v52 }
 0x42a   : > { %v1409_v53 = vld [vmem:[#allocation2] ss:$8 sm:$0x3]  ;;  %v1441_v38 = vld [vmem:[#allocation2 + $0x1] ss:$8 sm:$0x3] }
 0x42b   : > { %v1418_v54 = vrot.slane %v1409_v53, %v1979_v4  ;;  %v1414_v55 = vrot.slane %v1409_v53, %v1973_v3  ;;  %v1450_v9 = vrot.slane %v1441_v38, %v1979_v4  ;;  %v1446_v44 = vrot.slane %v1441_v38, %v1973_v3  ;;  %v1475_v39 = vld [vmem:[#allocation2 + $0x2] ss:$8 sm:$0x3]  ;;  %v1509_v43 = vld [vmem:[#allocation2 + $0x3] ss:$8 sm:$0x3] }
 0x42c   : > { %v1484_v12 = vrot.slane %v1475_v39, %v1979_v4  ;;  %v1480_v22 = vrot.slane %v1475_v39, %v1973_v3  ;;  %v1518_v56 = vrot.slane %v1509_v43, %v1979_v4  ;;  %v1514_v58 = vrot.slane %v1509_v43, %v1973_v3  ;;  %v1557_v60 = vld [vmem:[#allocation2 + $0x5] ss:$8 sm:$0x3]  ;;  %v1591_v62 = vld [vmem:[#allocation2 + $0x6] ss:$8 sm:$0x3] }
 0x42d   : > { %1423 = vrot.lane.b32.xlu0 %v1418_v54, %s1904_s13  ;;  %1421 = vrot.lane.b32.xlu1 %v1414_v55, %s1904_s13  ;;  %v1566_v61 = vrot.slane %v1557_v60, %v1979_v4  ;;  %v1562_v1 = vrot.slane %v1557_v60, %v1973_v3  ;;  %v1600_v5 = vrot.slane %v1591_v62, %v1979_v4  ;;  %v1625_v20 = vld [vmem:[#allocation2 + $0x7] ss:$8 sm:$0x3]  ;;  %v1543_v43 = vld [vmem:[#allocation2 + $0x4] ss:$8 sm:$0x3] }
 0x42e   : > { %v1596_v11 = vrot.slane %v1591_v62, %v1973_v3  ;;  %v1659_v28 = vld [vmem:[#allocation2 + $0x10] ss:$8 sm:$0x3]  ;;  %v1630_v41 = vrot.slane %v1625_v20, %v1973_v3  ;;  %v1634_v57 = vrot.slane %v1625_v20, %v1979_v4  ;;  %v1807_v62 = vld [vmem:[%s2596_s1 + $0x7] ss:$8 sm:$0x3]  ;;  %v1548_v20 = vrot.slane %v1543_v43, %v1973_v3 }
 0x42f   : > { %v1668_v10 = vrot.slane %v1659_v28, %v1979_v4  ;;  %v1664_v25 = vrot.slane %v1659_v28, %v1973_v3  ;;  %v1552_v28 = vrot.slane %v1543_v43, %v1979_v4  ;;  %v1648_v17 = vrot.slane %v1807_v62, %v1973_v3 }
 0x431   : > { %1455 = vrot.lane.b32.xlu0 %v1450_v9, %s1903_s12  ;;  %1453 = vrot.lane.b32.xlu1 %v1446_v44, %s1903_s12  ;;  %v1805_v9 = vld [vmem:[%s2596_s1 + $0x5] ss:$8 sm:$0x3] }
 0x435   : > { %1489 = vrot.lane.b32.xlu0 %v1484_v12, %s1905_s14  ;;  %1487 = vrot.lane.b32.xlu1 %v1480_v22, %s1905_s14 }
 0x439   : > { %1523 = vrot.lane.b32.xlu0 %v1518_v56, %s1906_s15  ;;  %1521 = vrot.lane.b32.xlu1 %v1514_v58, %s1906_s15  ;;  %v1806_v56 = vld [vmem:[%s2596_s1 + $0x6] ss:$8 sm:$0x3] }
 0x43d   : > { %1571 = vrot.lane.b32.xlu0 %v1566_v61, %s1907_s16  ;;  %1569 = vrot.lane.b32.xlu1 %v1562_v1, %s1907_s16  ;;  %v1580_v61 = vrot.slane %v1805_v9, %v1973_v3  ;;  %v1584_v1 = vrot.slane %v1805_v9, %v1979_v4 }
 0x441   : > { %1605 = vrot.lane.b32.xlu0 %v1600_v5, %s1908_s17  ;;  %1603 = vrot.lane.b32.xlu1 %v1596_v11, %s1908_s17 }
 0x445   : > { %1637 = vrot.lane.b32.xlu0 %v1630_v41, %s1909_s18  ;;  %1639 = vrot.lane.b32.xlu1 %v1634_v57, %s1909_s18  ;;  %v1614_v57 = vrot.slane %v1806_v56, %v1973_v3 }
 0x449   : > { %1673 = vrot.lane.b32.xlu1 %v1668_v10, %s1910_s19  ;;  %1671 = vrot.lane.b32.xlu0 %v1664_v25, %s1910_s19  ;;  %v1618_v10 = vrot.slane %v1806_v56, %v1979_v4 }
 0x49f   : > { %v1424_v14 = vpop.permute.xlu0 %1423  ;;  %v1422_v15 = vpop.permute.xlu1 %1421 }
 0x4a0   : > { %v1425_v35 = vsel %vm324_vm2, %v1422_v15, %v1424_v14  ;;  %v1426_v36 = vsel %vm324_vm2, %v1424_v14, %v1422_v15 }
 0x4a1   : > { %v1439_v63 = vmul.f32 %v1432_v40, %v1426_v36  ;;  %v1440_v7 = vmul.f32 %v1436_v31, %v1425_v35 }
 0x4a3   : > { %v1456_v8 = vpop.permute.xlu0 %1455  ;;  %v1454_v18 = vpop.permute.xlu1 %1453 }
 0x4a4   : > { %v1457_v29 = vsel %vm369_vm1, %v1454_v18, %v1456_v8  ;;  %v1458_v30 = vsel %vm369_vm1, %v1456_v8, %v1454_v18  ;;  %v1652_v8 = vrot.slane %v1807_v62, %v1979_v4 }
 0x4a5   : > { %v1471_v42 = vmul.f32 %v1464_v24, %v1458_v30  ;;  %v1472_v47 = vmul.f32 %v1468_v26, %v1457_v29  ;;  %v1808_v26 = vld [vmem:[%s2596_s1 + $0x10] ss:$8 sm:$0x3] }
 0x4a7   : > { %v1490_v32 = vpop.permute.xlu0 %1489  ;;  %v1488_v33 = vpop.permute.xlu1 %1487  ;;  %v1473_v53 = vadd.f32 %v1471_v42, %v1439_v63  ;;  %v1474_v54 = vadd.f32 %v1472_v47, %v1440_v7 }
 0x4a8   : > { %v1491_v19 = vsel %vm412_vm3, %v1488_v33, %v1490_v32  ;;  %v1492_v34 = vsel %vm412_vm3, %v1490_v32, %v1488_v33 }
 0x4a9   : > { %v1505_v50 = vmul.f32 %v1498_v0, %v1492_v34  ;;  %v1506_v45 = vmul.f32 %v1502_v59, %v1491_v19  ;;  %v1682_v0 = vrot.slane %v1808_v26, %v1973_v3  ;;  %v1686_v59 = vrot.slane %v1808_v26, %v1979_v4 }
 0x4aa   : > { %v1702_v4 = vrot.slane %v2506_v13, %v1973_v3 }
 0x4ab   : > { %v1524_v46 = vpop.permute.xlu0 %1523  ;;  %v1522_v51 = vpop.permute.xlu1 %1521  ;;  %v1507_v44 = vadd.f32 %v1505_v50, %v1473_v53  ;;  %v1508_v39 = vadd.f32 %v1506_v45, %v1474_v54 }
 0x4ac   : > { %v1525_v2 = vsel %vm455_vm4, %v1522_v51, %v1524_v46  ;;  %v1526_v52 = vsel %vm455_vm4, %v1524_v46, %v1522_v51 }
 0x4ad   : > { %v1539_v55 = vmul.f32 %v1532_v48, %v1526_v52  ;;  %v1540_v38 = vmul.f32 %v1536_v49, %v1525_v2 }
 0x4af   : > { %v1572_v12 = vpop.permute.xlu0 %1571  ;;  %v1570_v22 = vpop.permute.xlu1 %1569  ;;  %v1541_v58 = vadd.f32 %v1539_v55, %v1507_v44  ;;  %v1542_v60 = vadd.f32 %v1540_v38, %v1508_v39 }
 0x4b0   : > { %v1573_v5 = vsel %vm501_vm5, %v1570_v22, %v1572_v12  ;;  %v1574_v11 = vsel %vm501_vm5, %v1572_v12, %v1570_v22 }
 0x4b1   : > { %v1555_v18 = vadd.f32 %v1548_v20, %v1541_v58  ;;  %v1556_v21 = vadd.f32 %v1552_v28, %v1542_v60  ;;  %v1587_v23 = vmul.f32 %v1580_v61, %v1573_v5  ;;  %v1588_v24 = vmul.f32 %v1584_v1, %v1574_v11 }
 0x4b3   : > { %v1606_v41 = vpop.permute.xlu0 %1605  ;;  %v1604_v25 = vpop.permute.xlu1 %1603  ;;  %v1589_v33 = vadd.f32 %v1587_v23, %v1555_v18  ;;  %v1590_v35 = vadd.f32 %v1588_v24, %v1556_v21 }
 0x4b4   : > { %v1607_v14 = vsel %vm544_vm6, %v1604_v25, %v1606_v41  ;;  %v1608_v15 = vsel %vm544_vm6, %v1606_v41, %v1604_v25 }
 0x4b5   : > { %v1621_v29 = vmul.f32 %v1614_v57, %v1607_v14  ;;  %v1622_v30 = vmul.f32 %v1618_v10, %v1608_v15 }
 0x4b7   : > { %v1638_v37 = vpop.permute.xlu0 %1637  ;;  %v1640_v40 = vpop.permute.xlu1 %1639  ;;  %v1623_v34 = vadd.f32 %v1621_v29, %v1589_v33  ;;  %v1624_v42 = vadd.f32 %v1622_v30, %v1590_v35 }
 0x4b8   : > { %v1641_v31 = vsel %vm587_vm7, %v1638_v37, %v1640_v40  ;;  %v1642_v32 = vsel %vm587_vm7, %v1640_v40, %v1638_v37 }
 0x4b9   : > { %v1655_v36 = vmul.f32 %v1648_v17, %v1641_v31  ;;  %v1656_v19 = vmul.f32 %v1652_v8, %v1642_v32 }
 0x4bb   : > { %v1674_v47 = vpop.permute.xlu1 %1673  ;;  %v1672_v48 = vpop.permute.xlu0 %1671  ;;  %v1657_v7 = vadd.f32 %v1655_v36, %v1623_v34  ;;  %v1658_v50 = vadd.f32 %v1656_v19, %v1624_v42 }
 0x4bc   : > { %v1675_v49 = vsel %vm630_vm8, %v1672_v48, %v1674_v47  ;;  %v1676_v63 = vsel %vm630_vm8, %v1674_v47, %v1672_v48 }
 0x4bd   : > { %v1689_v45 = vmul.f32 %v1682_v0, %v1675_v49  ;;  %v1690_v46 = vmul.f32 %v1686_v59, %v1676_v63 }
 0x4bf   : > { %v1691_v51 = vadd.f32 %v1689_v45, %v1657_v7  ;;  %v1692_v2 = vadd.f32 %v1690_v46, %v1658_v50 }
 0x4c1   : > { %v1703_v52 = vadd.f32 %v1702_v4, %v1691_v51  ;;  %v1704_v53 = vadd.f32 %v1702_v4, %v1692_v2 }
 0x4c3   : > { %v1707_v54 = vcombine.low %v1703_v52, %v1704_v53 }
 0x4c5   : > { %v1714_v55 = vrot.slane %v1707_v54, %v2032_v27 }
 0x4c7   : > { %v1721_v16 = vrot.slane %v1714_v55, %v2032_v27 }
 0x4c9   : > { %1723 = vst.msk [vmem:[%s304_s10] sm:$0x3] %vm1981_vm0, %v1721_v16 }
 0x4ca PF: > { %s20_s29 = sadd.s32 1, %s1901_s29  }
 0x4cb   : > { %p17_p4 = scmp.ge.s32.totalorder %s20_s29, 4  }
 0x4cd   :  { %19 = sbr.rel (!%p17_p4) target bundleno = 3 (0x3), region = 97 }

</bundles_post_ra>
